<compile_context>
chip_gen: v7x
topology: tpu7x:2x2x1
jax: 0.10.0
libtpu: 0.0.40
codegen_flags: <defaults>
</compile_context>

<pallas_src>
import functools
import math

import jax
import jax.numpy as jnp
from jax import lax
from jax.experimental import pallas as pl
from jax.experimental.pallas import tpu as pltpu

_LANE = 128


def _round_up(v, m):
    return ((v + m - 1) // m) * m


def _pad2(a, r, c):
    return jnp.pad(a, ((0, r - a.shape[0]), (0, c - a.shape[1])))


def _vmem_limit_bytes(Ng, FP, EP, L, P):
    """Rough per-step footprint (+25% headroom), capped v7x-safe at 48 MiB."""
    weights = (FP * EP + EP * EP + 2 * L * EP * EP) * 2 \
        + (3 * EP + 2 * L * EP + P * EP) * 4
    per_graph_io = Ng * Ng * 2 + Ng * FP * 2 + Ng * 4 + 8 * 2 * EP * 4
    temps = 10 * Ng * EP * 4 + 4 * Ng * Ng * 4
    est = int((2 * (weights + per_graph_io) + temps) * 1.25)
    return max(min(est, 48 * 1024 * 1024), 16 * 1024 * 1024)


# --------------------------------------------------------------------- per-graph kernel


def _make_graph_kernel(*, num_layers, top_k_every_n, ratio):
    def kernel(a_ref, x_ref, s0_ref,
               c1w_ref, c1b_ref, t1w_ref, t1b_ref, bnsh_ref,
               cw_ref, cb_ref, dw_ref, db_ref, pw_ref,
               o_ref):
        f32 = jnp.float32
        bf16 = jnp.bfloat16

        a = a_ref[...]                              # bf16 [Ng, Ng] (0/1, exact)
        Ng = a.shape[0]
        EP = bnsh_ref.shape[1]

        s0 = s0_ref[...]                            # f32 [Ng, 1] = valid * deg0^-1/2
        keep = (s0 > 0.0).astype(f32)               # valid-node mask of this graph
        bn_shift = jnp.broadcast_to(bnsh_ref[...], (Ng, EP))   # hoisted (no per-layer bcast)

        def degree_scale(keep_col):
            # s = keep * deg^-1/2, deg = keep * ((A @ keep) + 1)   (self loop)
            d = jnp.dot(a, keep_col.astype(bf16), preferred_element_type=f32)
            deg = keep_col * (d + 1.0)
            return keep_col * jnp.where(deg > 0.0, lax.rsqrt(deg), 0.0)

        def gcn_conv(h_in, s, wc, bc):
            # A_norm @ (h @ Wc) + bc without materializing A_norm
            z = jnp.dot(h_in.astype(bf16), wc, preferred_element_type=f32)
            prop = jnp.dot(a, (s * z).astype(bf16), preferred_element_type=f32)
            return s * prop + (s * s) * z + bc

        def dense_bn(h_in, wd, bd):
            # eval-mode BN scale is folded into (wd, bd) at pack time; shift added here.
            y = jnp.dot(h_in.astype(bf16), wd, preferred_element_type=f32) + bd
            return jnp.maximum(y, 0.0) + bn_shift

        # ---- conv1 -> relu(transf1) -> bn1   (initial degree scale precomputed = s0)
        s = s0
        h = gcn_conv(x_ref[...], s, c1w_ref[...], c1b_ref[...])
        h = dense_bn(h, t1w_ref[...], t1b_ref[...])

        rep = jnp.zeros((1, 2 * EP), f32)
        pool_idx = 0
        s_fresh = True                               # degree scale valid for current keep
        for i in range(num_layers):
            if not s_fresh:                          # renormalize only after keep changed
                s = degree_scale(keep)
                s_fresh = True
            h = gcn_conv(h, s, cw_ref[i], cb_ref[i])
            h = dense_bn(h, dw_ref[i], db_ref[i])

            if i % top_k_every_n == 0:
                # ---- TopKPooling score: tanh((h . w) / ||w||)
                w = pw_ref[pool_idx]                                    # [1, EP]
                inv_wn = lax.rsqrt(jnp.sum(w * w))
                ts = jnp.tanh(jnp.sum(h * w, axis=1, keepdims=True) * inv_wn)   # [Ng,1]

                # ---- fused top-ceil(ratio * n_alive) selection
                # Dead/padded nodes carry -1e30, so they can never out-rank an alive node
                # (tanh >= -1) and no explicit alive mask is needed in the comparison.
                sck = jnp.where(keep > 0.0, ts, -1e30)                  # [Ng, 1]
                sck_row = jnp.transpose(sck)                            # [1, Ng]
                cols = lax.broadcasted_iota(jnp.int32, (Ng, Ng), 1)
                rows = lax.broadcasted_iota(jnp.int32, (Ng, Ng), 0)
                higher = (sck_row > sck) | ((sck_row == sck) & (cols < rows))
                rank = jnp.sum(jnp.where(higher, 1.0, 0.0), axis=1, keepdims=True)
                k_keep = jnp.ceil(ratio * jnp.sum(keep))
                keep = jnp.where((keep > 0.0) & (rank < k_keep), 1.0, 0.0)
                s_fresh = False

                # ---- gate survivors by score, then global max + mean pooling
                h = jnp.where(keep > 0.0, h * ts, 0.0)
                cnt = jnp.sum(keep)
                gap = jnp.sum(h, axis=0, keepdims=True) / jnp.maximum(cnt, 1.0)  # exact
                gmp = jnp.max(jnp.where(keep > 0.0, h, -1e30), axis=0, keepdims=True)
                gmp = jnp.where(cnt > 0.0, gmp, 0.0)                    # empty-graph guard
                rep = rep + jnp.concatenate([gmp, gap], axis=1)
                pool_idx += 1

        # lane-dense output slab; sublane-broadcast to keep the block (8, 2*EP)-tiled
        o_ref[...] = jnp.broadcast_to(rep, (8, 2 * EP))

    return kernel


# ----------------------------------------------------------------------- init / packing


def init_params(key, input_dim, emb, num_layers, top_k_every_n, dense_neurons):
    ks = list(jax.random.split(key, 32))

    def nrm(shape, scale=0.1):
        k = ks.pop()
        return jax.random.normal(k, shape, jnp.float32) * scale

    # eval-mode BatchNorm1d with default init (gamma=1, beta=0, mean=0, var=1)
    bn_scale = jnp.full((1, emb), 1.0 / math.sqrt(1.0 + 1e-5), jnp.float32)
    bn_shift = jnp.zeros((1, emb), jnp.float32)

    p = {
        "conv1_w": nrm((input_dim, emb)),
        "conv1_b": jnp.zeros((1, emb), jnp.float32),
        "transf1_w": nrm((emb, emb)),
        "transf1_b": nrm((1, emb)),
        "bn_scale": bn_scale,
        "bn_shift": bn_shift,
        "conv_w": [], "conv_b": [], "dense_w": [], "dense_b": [], "pool_w": [],
        "linear1_w": nrm((2 * emb, dense_neurons)),
        "linear1_b": nrm((1, dense_neurons)),
        "linear2_w": nrm((dense_neurons, dense_neurons // 2)),
        "linear2_b": nrm((1, dense_neurons // 2)),
        "linear3_w": nrm((dense_neurons // 2, 1)),
        "linear3_b": nrm((1, 1)),
    }
    for i in range(num_layers):
        p["conv_w"].append(nrm((emb, emb)))
        p["conv_b"].append(jnp.zeros((1, emb), jnp.float32))
        p["dense_w"].append(nrm((emb, emb)))
        p["dense_b"].append(nrm((1, emb)))
        if i % top_k_every_n == 0:
            p["pool_w"].append(nrm((emb, 1)))
    return p


def pack_params(p, *, input_dim, emb):
    """Fold eval-mode BN into the dense weights, pad lane dims to 128, bf16 MXU weights."""
    FP = _round_up(input_dim, _LANE)
    EP = _round_up(emb, _LANE)

    # BN scale is strictly positive for default init -> relu/scale commutation is valid.
    # TODO(synk): with trained per-layer BN parameters, pack per-layer scale/shift.
    bns = p["bn_scale"]
    bnb = p["bn_shift"]

    return {
        "conv1_w": _pad2(p["conv1_w"], FP, EP).astype(jnp.bfloat16),
        "conv1_b": _pad2(p["conv1_b"], 1, EP),
        "transf1_w": _pad2(p["transf1_w"] * bns, EP, EP).astype(jnp.bfloat16),
        "transf1_b": _pad2(p["transf1_b"] * bns, 1, EP),
        "bn_shift": _pad2(bnb, 1, EP),
        "convs_w": jnp.stack([_pad2(w, EP, EP) for w in p["conv_w"]]).astype(jnp.bfloat16),
        "convs_b": jnp.stack([_pad2(b, 1, EP) for b in p["conv_b"]]),
        "denses_w": jnp.stack([_pad2(w * bns, EP, EP)
                               for w in p["dense_w"]]).astype(jnp.bfloat16),
        "denses_b": jnp.stack([_pad2(b * bns, 1, EP) for b in p["dense_b"]]),
        "pools_w": jnp.stack([_pad2(w.reshape(1, emb), 1, EP) for w in p["pool_w"]]),
        # head runs in plain XLA on the [B, 2*emb] readout -> keep raw / unpadded
        "linear1_w": p["linear1_w"], "linear1_b": p["linear1_b"],
        "linear2_w": p["linear2_w"], "linear2_b": p["linear2_b"],
        "linear3_w": p["linear3_w"], "linear3_b": p["linear3_b"],
    }


# --------------------------------------------------------------------------- forward


@functools.partial(jax.jit, static_argnames=("num_graphs", "num_layers", "top_k_every_n",
                                              "ratio", "max_nodes_per_graph"))
def protein_dna_gnn_forward(packed, x, edge_attr, adj, batch, *,
                            num_graphs, num_layers, top_k_every_n, ratio,
                            max_nodes_per_graph):
    # TODO(synk): edge_attr only flows through TopKPooling.filter_adj in the reference and
    # never affects the output (GCNConv gets no edge weights) -> unused.
    del edge_attr
    N = x.shape[0]
    FP = packed["conv1_w"].shape[0]
    EP = packed["conv1_w"].shape[1]
    L = num_layers
    P = packed["pools_w"].shape[0]
    emb = packed["linear1_w"].shape[0] // 2
    Ng = _round_up(max(int(max_nodes_per_graph), 8), 8)   # padded nodes per graph block

    # ---- per-graph packing (assumes batch is sorted / graphs contiguous, PyG convention)
    gids = jnp.arange(num_graphs, dtype=jnp.int32)
    counts = jnp.sum((batch[None, :] == gids[:, None]).astype(jnp.int32), axis=1)
    offsets = jnp.concatenate([jnp.zeros((1,), jnp.int32),
                               jnp.cumsum(counts)[:-1].astype(jnp.int32)])
    node = jnp.arange(Ng, dtype=jnp.int32)
    idx = jnp.clip(offsets[:, None] + node[None, :], 0, N - 1)        # [B, Ng]
    valid = node[None, :] < counts[:, None]                           # [B, Ng]

    xg = jnp.where(valid[:, :, None], x[idx], 0.0)                    # [B, Ng, F]
    xg = jnp.pad(xg, ((0, 0), (0, 0), (0, FP - x.shape[1]))).astype(jnp.bfloat16)

    ag_f = jnp.where(valid[:, :, None] & valid[:, None, :],
                     adj[idx[:, :, None], idx[:, None, :]], 0.0)      # [B, Ng, Ng]
    ag = ag_f.astype(jnp.bfloat16)                                    # 0/1 -> exact bf16
    # initial degree scale (keep = valid) precomputed here; later scales are in-kernel
    rowdeg = jnp.sum(ag_f, axis=2)
    s0 = jnp.where(valid, lax.rsqrt(rowdeg + 1.0), 0.0)[:, :, None].astype(jnp.float32)

    kernel = _make_graph_kernel(num_layers=num_layers, top_k_every_n=top_k_every_n,
                                ratio=float(ratio))

    per_g = lambda g: (g, 0, 0)
    const2 = lambda g: (0, 0)
    const3 = lambda g: (0, 0, 0)
    in_specs = [
        pl.BlockSpec((None, Ng, Ng), per_g),     # adjacency block of this graph
        pl.BlockSpec((None, Ng, FP), per_g),     # node features of this graph
        pl.BlockSpec((None, Ng, 1), per_g),      # initial degree scale / valid mask
        pl.BlockSpec((FP, EP), const2),          # conv1_w (resident across grid steps)
        pl.BlockSpec((1, EP), const2),           # conv1_b
        pl.BlockSpec((EP, EP), const2),          # transf1_w (BN folded)
        pl.BlockSpec((1, EP), const2),           # transf1_b (BN folded)
        pl.BlockSpec((1, EP), const2),           # bn_shift
        pl.BlockSpec((L, EP, EP), const3),       # convs_w
        pl.BlockSpec((L, 1, EP), const3),        # convs_b
        pl.BlockSpec((L, EP, EP), const3),       # denses_w (BN folded)
        pl.BlockSpec((L, 1, EP), const3),        # denses_b (BN folded)
        pl.BlockSpec((P, 1, EP), const3),        # pools_w
    ]
    out_specs = pl.BlockSpec((None, 8, 2 * EP), per_g)
    out_shape = jax.ShapeDtypeStruct((num_graphs, 8, 2 * EP), jnp.float32)

    rep3 = pl.pallas_call(
        kernel,
        grid=(num_graphs,),
        in_specs=in_specs,
        out_specs=out_specs,
        out_shape=out_shape,
        compiler_params=pltpu.CompilerParams(
            dimension_semantics=("parallel",),
            vmem_limit_bytes=_vmem_limit_bytes(Ng, FP, EP, L, P)),
    )(ag, xg, s0,
      packed["conv1_w"], packed["conv1_b"],
      packed["transf1_w"], packed["transf1_b"], packed["bn_shift"],
      packed["convs_w"], packed["convs_b"],
      packed["denses_w"], packed["denses_b"], packed["pools_w"])

    # ---- 3-layer prediction head in plain XLA (lane-dense readout from the kernel);
    # F.dropout(p=0.8) is identity in eval mode.
    rep = rep3[:, 0, :]                                               # [B, 2*EP]
    rep = jnp.concatenate([rep[:, :emb], rep[:, EP:EP + emb]], axis=1)  # [B, 2*emb]
    h1 = jnp.maximum(rep @ packed["linear1_w"] + packed["linear1_b"], 0.0)
    h2 = jnp.maximum(h1 @ packed["linear2_w"] + packed["linear2_b"], 0.0)
    return h2 @ packed["linear3_w"] + packed["linear3_b"]


# --------------------------------------------------------------------------- example


if __name__ == "__main__":
    input_dim = 16
    emb = 32
    num_layers = 3
    top_k_every_n = 1
    ratio = 0.5
    dense_neurons = 64
    num_graphs = 2
    nodes_per_graph = 12
    N = num_graphs * nodes_per_graph

    key = jax.random.PRNGKey(0)
    k_x, k_a, k_e, k_p = jax.random.split(key, 4)

    x = jax.random.normal(k_x, (N, input_dim), jnp.float32)
    batch = jnp.repeat(jnp.arange(num_graphs, dtype=jnp.int32), nodes_per_graph)

    # symmetric, within-graph random adjacency (no self loops) == undirected edge_index
    same_graph = (batch[:, None] == batch[None, :])
    r = jax.random.uniform(k_a, (N, N))
    r = (r + r.T) * 0.5
    eye = jnp.eye(N, dtype=bool)
    adj = jnp.where(same_graph & (~eye) & (r < 0.35), 1.0, 0.0).astype(jnp.float32)

    edge_attr = jax.random.normal(k_e, (N, N, 1), jnp.float32)  # unused (see TODO)

    raw = init_params(k_p, input_dim, emb, num_layers, top_k_every_n, dense_neurons)
    packed = pack_params(raw, input_dim=input_dim, emb=emb)

    out = protein_dna_gnn_forward(
        packed, x, edge_attr, adj, batch,
        num_graphs=num_graphs, num_layers=num_layers,
        top_k_every_n=top_k_every_n, ratio=ratio,
        max_nodes_per_graph=nodes_per_graph)
    out = jax.block_until_ready(out)

    assert out.shape == (num_graphs, 1)
    assert bool(jnp.all(jnp.isfinite(out)))
    print("KERNEL_OK")
</pallas_src>

<mosaic_0001>
module attributes {stable_mosaic.version = 11 : i64} {
  func.func @kernel(%arg0: i32, %arg1: memref<1x16x16xbf16, #tpu.memory_space<vmem>>, %arg2: memref<1x16x128xbf16, #tpu.memory_space<vmem>>, %arg3: memref<1x16x1xf32, #tpu.memory_space<vmem>>, %arg4: memref<128x128xbf16, #tpu.memory_space<vmem>>, %arg5: memref<1x128xf32, #tpu.memory_space<vmem>>, %arg6: memref<128x128xbf16, #tpu.memory_space<vmem>>, %arg7: memref<1x128xf32, #tpu.memory_space<vmem>>, %arg8: memref<1x128xf32, #tpu.memory_space<vmem>>, %arg9: memref<3x128x128xbf16, #tpu.memory_space<vmem>>, %arg10: memref<3x1x128xf32, #tpu.memory_space<vmem>>, %arg11: memref<3x128x128xbf16, #tpu.memory_space<vmem>>, %arg12: memref<3x1x128xf32, #tpu.memory_space<vmem>>, %arg13: memref<3x1x128xf32, #tpu.memory_space<vmem>>, %arg14: memref<1x8x256xf32, #tpu.memory_space<vmem>>) attributes {dimension_semantics = [#tpu.dimension_semantics<parallel>], iteration_bounds = array<i64: 2>, scalar_prefetch = 0 : i64, scratch_operands = 0 : i64, tpu.core_type = #tpu.core_type<tc>, window_params = [{transform_indices = @transform_0, window_bounds = array<i64: 1, 16, 16>}, {transform_indices = @transform_1, window_bounds = array<i64: 1, 16, 128>}, {transform_indices = @transform_2, window_bounds = array<i64: 1, 16, 1>}, {pipeline_mode = #tpu.pipeline_mode<synchronous>, transform_indices = @transform_3, window_bounds = array<i64: 128, 128>}, {pipeline_mode = #tpu.pipeline_mode<synchronous>, transform_indices = @transform_4, window_bounds = array<i64: 1, 128>}, {pipeline_mode = #tpu.pipeline_mode<synchronous>, transform_indices = @transform_5, window_bounds = array<i64: 128, 128>}, {pipeline_mode = #tpu.pipeline_mode<synchronous>, transform_indices = @transform_6, window_bounds = array<i64: 1, 128>}, {pipeline_mode = #tpu.pipeline_mode<synchronous>, transform_indices = @transform_7, window_bounds = array<i64: 1, 128>}, {pipeline_mode = #tpu.pipeline_mode<synchronous>, transform_indices = @transform_8, window_bounds = array<i64: 3, 128, 128>}, {pipeline_mode = #tpu.pipeline_mode<synchronous>, transform_indices = @transform_9, window_bounds = array<i64: 3, 1, 128>}, {pipeline_mode = #tpu.pipeline_mode<synchronous>, transform_indices = @transform_10, window_bounds = array<i64: 3, 128, 128>}, {pipeline_mode = #tpu.pipeline_mode<synchronous>, transform_indices = @transform_11, window_bounds = array<i64: 3, 1, 128>}, {pipeline_mode = #tpu.pipeline_mode<synchronous>, transform_indices = @transform_12, window_bounds = array<i64: 3, 1, 128>}, {transform_indices = @transform_13, window_bounds = array<i64: 1, 8, 256>}]} {
    %c0 = arith.constant 0 : index
    %c0_0 = arith.constant 0 : index
    %c0_1 = arith.constant 0 : index
    %0 = vector.load %arg1[%c0, %c0_0, %c0_1] : memref<1x16x16xbf16, #tpu.memory_space<vmem>>, vector<1x16x16xbf16>
    %1 = vector.shape_cast %0 : vector<1x16x16xbf16> to vector<16x16xbf16>
    %c0_2 = arith.constant 0 : index
    %c0_3 = arith.constant 0 : index
    %c0_4 = arith.constant 0 : index
    %2 = vector.load %arg3[%c0_2, %c0_3, %c0_4] : memref<1x16x1xf32, #tpu.memory_space<vmem>>, vector<1x16x1xf32>
    %3 = vector.shape_cast %2 : vector<1x16x1xf32> to vector<16x1xf32>
    %cst = arith.constant 0.000000e+00 : f32
    %4 = vector.broadcast %cst : f32 to vector<16x1xf32>
    %5 = arith.cmpf ogt, %3, %4 : vector<16x1xf32>
    %6 = arith.extui %5 : vector<16x1xi1> to vector<16x1xi32>
    %7 = arith.sitofp %6 : vector<16x1xi32> to vector<16x1xf32>
    %c0_5 = arith.constant 0 : index
    %c0_6 = arith.constant 0 : index
    %8 = vector.load %arg8[%c0_5, %c0_6] : memref<1x128xf32, #tpu.memory_space<vmem>>, vector<1x128xf32>
    %9 = vector.shape_cast %8 : vector<1x128xf32> to vector<1x128xf32>
    %10 = vector.broadcast %9 : vector<1x128xf32> to vector<16x128xf32>
    %c0_7 = arith.constant 0 : index
    %c0_8 = arith.constant 0 : index
    %c0_9 = arith.constant 0 : index
    %11 = vector.load %arg2[%c0_7, %c0_8, %c0_9] : memref<1x16x128xbf16, #tpu.memory_space<vmem>>, vector<1x16x128xbf16>
    %12 = vector.shape_cast %11 : vector<1x16x128xbf16> to vector<16x128xbf16>
    %c0_10 = arith.constant 0 : index
    %c0_11 = arith.constant 0 : index
    %13 = vector.load %arg4[%c0_10, %c0_11] : memref<128x128xbf16, #tpu.memory_space<vmem>>, vector<128x128xbf16>
    %c0_12 = arith.constant 0 : index
    %c0_13 = arith.constant 0 : index
    %14 = vector.load %arg5[%c0_12, %c0_13] : memref<1x128xf32, #tpu.memory_space<vmem>>, vector<1x128xf32>
    %cst_14 = arith.constant dense<0.000000e+00> : vector<16x128xf32>
    %15 = tpu.matmul %12, %13, %cst_14 {dimension_numbers = #tpu.dot_dimension_numbers<[1], [0], [0], [1], [0, 0, 1, 1], [], []>} : vector<16x128xbf16>, vector<128x128xbf16>, vector<16x128xf32> -> vector<16x128xf32>
    %16 = vector.broadcast %3 : vector<16x1xf32> to vector<16x128xf32>
    %17 = arith.mulf %16, %15 : vector<16x128xf32>
    %18 = arith.truncf %17 : vector<16x128xf32> to vector<16x128xbf16>
    %cst_15 = arith.constant dense<0.000000e+00> : vector<16x128xf32>
    %19 = tpu.matmul %1, %18, %cst_15 {dimension_numbers = #tpu.dot_dimension_numbers<[1], [0], [0], [1], [0, 0, 1, 1], [], []>} : vector<16x16xbf16>, vector<16x128xbf16>, vector<16x128xf32> -> vector<16x128xf32>
    %20 = vector.broadcast %3 : vector<16x1xf32> to vector<16x128xf32>
    %21 = arith.mulf %20, %19 : vector<16x128xf32>
    %22 = arith.mulf %3, %3 : vector<16x1xf32>
    %23 = vector.broadcast %22 : vector<16x1xf32> to vector<16x128xf32>
    %24 = arith.mulf %23, %15 : vector<16x128xf32>
    %25 = arith.addf %21, %24 : vector<16x128xf32>
    %26 = vector.broadcast %14 : vector<1x128xf32> to vector<16x128xf32>
    %27 = arith.addf %25, %26 : vector<16x128xf32>
    %c0_16 = arith.constant 0 : index
    %c0_17 = arith.constant 0 : index
    %28 = vector.load %arg6[%c0_16, %c0_17] : memref<128x128xbf16, #tpu.memory_space<vmem>>, vector<128x128xbf16>
    %c0_18 = arith.constant 0 : index
    %c0_19 = arith.constant 0 : index
    %29 = vector.load %arg7[%c0_18, %c0_19] : memref<1x128xf32, #tpu.memory_space<vmem>>, vector<1x128xf32>
    %30 = arith.truncf %27 : vector<16x128xf32> to vector<16x128xbf16>
    %cst_20 = arith.constant dense<0.000000e+00> : vector<16x128xf32>
    %31 = tpu.matmul %30, %28, %cst_20 {dimension_numbers = #tpu.dot_dimension_numbers<[1], [0], [0], [1], [0, 0, 1, 1], [], []>} : vector<16x128xbf16>, vector<128x128xbf16>, vector<16x128xf32> -> vector<16x128xf32>
    %32 = vector.broadcast %29 : vector<1x128xf32> to vector<16x128xf32>
    %33 = arith.addf %31, %32 : vector<16x128xf32>
    %cst_21 = arith.constant 0.000000e+00 : f32
    %34 = vector.broadcast %cst_21 : f32 to vector<16x128xf32>
    %35 = arith.maximumf %33, %34 : vector<16x128xf32>
    %36 = arith.addf %35, %10 : vector<16x128xf32>
    %cst_22 = arith.constant 0.000000e+00 : f32
    %37 = vector.broadcast %cst_22 : f32 to vector<1x256xf32>
    %c0_23 = arith.constant 0 : index
    %c0_24 = arith.constant 0 : index
    %c0_25 = arith.constant 0 : index
    %38 = vector.load %arg9[%c0_23, %c0_24, %c0_25] : memref<3x128x128xbf16, #tpu.memory_space<vmem>>, vector<1x128x128xbf16>
    %39 = vector.shape_cast %38 : vector<1x128x128xbf16> to vector<128x128xbf16>
    %c0_26 = arith.constant 0 : index
    %c0_27 = arith.constant 0 : index
    %c0_28 = arith.constant 0 : index
    %40 = vector.load %arg10[%c0_26, %c0_27, %c0_28] : memref<3x1x128xf32, #tpu.memory_space<vmem>>, vector<1x1x128xf32>
    %41 = vector.shape_cast %40 : vector<1x1x128xf32> to vector<1x128xf32>
    %42 = arith.truncf %36 : vector<16x128xf32> to vector<16x128xbf16>
    %cst_29 = arith.constant dense<0.000000e+00> : vector<16x128xf32>
    %43 = tpu.matmul %42, %39, %cst_29 {dimension_numbers = #tpu.dot_dimension_numbers<[1], [0], [0], [1], [0, 0, 1, 1], [], []>} : vector<16x128xbf16>, vector<128x128xbf16>, vector<16x128xf32> -> vector<16x128xf32>
    %44 = vector.broadcast %3 : vector<16x1xf32> to vector<16x128xf32>
    %45 = arith.mulf %44, %43 : vector<16x128xf32>
    %46 = arith.truncf %45 : vector<16x128xf32> to vector<16x128xbf16>
    %cst_30 = arith.constant dense<0.000000e+00> : vector<16x128xf32>
    %47 = tpu.matmul %1, %46, %cst_30 {dimension_numbers = #tpu.dot_dimension_numbers<[1], [0], [0], [1], [0, 0, 1, 1], [], []>} : vector<16x16xbf16>, vector<16x128xbf16>, vector<16x128xf32> -> vector<16x128xf32>
    %48 = vector.broadcast %3 : vector<16x1xf32> to vector<16x128xf32>
    %49 = arith.mulf %48, %47 : vector<16x128xf32>
    %50 = arith.mulf %3, %3 : vector<16x1xf32>
    %51 = vector.broadcast %50 : vector<16x1xf32> to vector<16x128xf32>
    %52 = arith.mulf %51, %43 : vector<16x128xf32>
    %53 = arith.addf %49, %52 : vector<16x128xf32>
    %54 = vector.broadcast %41 : vector<1x128xf32> to vector<16x128xf32>
    %55 = arith.addf %53, %54 : vector<16x128xf32>
    %c0_31 = arith.constant 0 : index
    %c0_32 = arith.constant 0 : index
    %c0_33 = arith.constant 0 : index
    %56 = vector.load %arg11[%c0_31, %c0_32, %c0_33] : memref<3x128x128xbf16, #tpu.memory_space<vmem>>, vector<1x128x128xbf16>
    %57 = vector.shape_cast %56 : vector<1x128x128xbf16> to vector<128x128xbf16>
    %c0_34 = arith.constant 0 : index
    %c0_35 = arith.constant 0 : index
    %c0_36 = arith.constant 0 : index
    %58 = vector.load %arg12[%c0_34, %c0_35, %c0_36] : memref<3x1x128xf32, #tpu.memory_space<vmem>>, vector<1x1x128xf32>
    %59 = vector.shape_cast %58 : vector<1x1x128xf32> to vector<1x128xf32>
    %60 = arith.truncf %55 : vector<16x128xf32> to vector<16x128xbf16>
    %cst_37 = arith.constant dense<0.000000e+00> : vector<16x128xf32>
    %61 = tpu.matmul %60, %57, %cst_37 {dimension_numbers = #tpu.dot_dimension_numbers<[1], [0], [0], [1], [0, 0, 1, 1], [], []>} : vector<16x128xbf16>, vector<128x128xbf16>, vector<16x128xf32> -> vector<16x128xf32>
    %62 = vector.broadcast %59 : vector<1x128xf32> to vector<16x128xf32>
    %63 = arith.addf %61, %62 : vector<16x128xf32>
    %cst_38 = arith.constant 0.000000e+00 : f32
    %64 = vector.broadcast %cst_38 : f32 to vector<16x128xf32>
    %65 = arith.maximumf %63, %64 : vector<16x128xf32>
    %66 = arith.addf %65, %10 : vector<16x128xf32>
    %c0_39 = arith.constant 0 : index
    %c0_40 = arith.constant 0 : index
    %c0_41 = arith.constant 0 : index
    %67 = vector.load %arg13[%c0_39, %c0_40, %c0_41] : memref<3x1x128xf32, #tpu.memory_space<vmem>>, vector<1x1x128xf32>
    %68 = vector.shape_cast %67 : vector<1x1x128xf32> to vector<1x128xf32>
    %69 = arith.mulf %68, %68 : vector<1x128xf32>
    %70 = vector.shape_cast %69 : vector<1x128xf32> to vector<1x1x128xf32>
    %cst_42 = arith.constant dense<0.000000e+00> : vector<1xf32>
    %71 = vector.multi_reduction <add>, %70, %cst_42 [1, 2] : vector<1x1x128xf32> to vector<1xf32>
    %72 = vector.shape_cast %71 : vector<1xf32> to vector<1x1x1xf32>
    %73 = vector.extract %72[0, 0, 0] : f32 from vector<1x1x1xf32>
    %74 = math.rsqrt %73 : f32
    %75 = vector.broadcast %68 : vector<1x128xf32> to vector<16x128xf32>
    %76 = arith.mulf %66, %75 : vector<16x128xf32>
    %cst_43 = arith.constant dense<0.000000e+00> : vector<16xf32>
    %77 = vector.multi_reduction <add>, %76, %cst_43 [1] : vector<16x128xf32> to vector<16xf32>
    %78 = vector.shape_cast %77 : vector<16xf32> to vector<16x1xf32>
    %79 = vector.broadcast %74 : f32 to vector<16x1xf32>
    %80 = arith.mulf %78, %79 : vector<16x1xf32>
    %81 = math.tanh %80 : vector<16x1xf32>
    %cst_44 = arith.constant 0.000000e+00 : f32
    %82 = vector.broadcast %cst_44 : f32 to vector<16x1xf32>
    %83 = arith.cmpf ogt, %7, %82 : vector<16x1xf32>
    %cst_45 = arith.constant -1.000000e+30 : f32
    %84 = vector.broadcast %cst_45 : f32 to vector<16x1xf32>
    %85 = arith.select %83, %81, %84 : vector<16x1xi1>, vector<16x1xf32>
    %86 = tpu.transpose %85, [1, 0] : vector<16x1xf32> -> vector<1x16xf32>
    %87 = tpu.iota {dimensions = array<i32: 1>} : vector<16x16xi32>
    %88 = tpu.iota {dimensions = array<i32: 0>} : vector<16x16xi32>
    %89 = vector.broadcast %86 : vector<1x16xf32> to vector<16x16xf32>
    %90 = vector.broadcast %85 : vector<16x1xf32> to vector<16x16xf32>
    %91 = arith.cmpf ogt, %89, %90 : vector<16x16xf32>
    %92 = vector.broadcast %86 : vector<1x16xf32> to vector<16x16xf32>
    %93 = vector.broadcast %85 : vector<16x1xf32> to vector<16x16xf32>
    %94 = arith.cmpf oeq, %92, %93 : vector<16x16xf32>
    %95 = arith.cmpi slt, %87, %88 : vector<16x16xi32>
    %96 = arith.andi %94, %95 : vector<16x16xi1>
    %97 = arith.ori %91, %96 : vector<16x16xi1>
    %cst_46 = arith.constant 1.000000e+00 : f32
    %cst_47 = arith.constant 0.000000e+00 : f32
    %98 = vector.broadcast %cst_46 : f32 to vector<16x16xf32>
    %99 = vector.broadcast %cst_47 : f32 to vector<16x16xf32>
    %100 = arith.select %97, %98, %99 : vector<16x16xi1>, vector<16x16xf32>
    %cst_48 = arith.constant dense<0.000000e+00> : vector<16xf32>
    %101 = vector.multi_reduction <add>, %100, %cst_48 [1] : vector<16x16xf32> to vector<16xf32>
    %102 = vector.shape_cast %101 : vector<16xf32> to vector<16x1xf32>
    %103 = vector.shape_cast %7 : vector<16x1xf32> to vector<1x16x1xf32>
    %cst_49 = arith.constant dense<0.000000e+00> : vector<1xf32>
    %104 = vector.multi_reduction <add>, %103, %cst_49 [1, 2] : vector<1x16x1xf32> to vector<1xf32>
    %105 = vector.shape_cast %104 : vector<1xf32> to vector<1x1x1xf32>
    %106 = vector.extract %105[0, 0, 0] : f32 from vector<1x1x1xf32>
    %cst_50 = arith.constant 5.000000e-01 : f32
    %107 = arith.mulf %cst_50, %106 : f32
    %108 = math.ceil %107 : f32
    %cst_51 = arith.constant 0.000000e+00 : f32
    %109 = vector.broadcast %cst_51 : f32 to vector<16x1xf32>
    %110 = arith.cmpf ogt, %7, %109 : vector<16x1xf32>
    %111 = vector.broadcast %108 : f32 to vector<16x1xf32>
    %112 = arith.cmpf olt, %102, %111 : vector<16x1xf32>
    %113 = arith.andi %110, %112 : vector<16x1xi1>
    %cst_52 = arith.constant 1.000000e+00 : f32
    %cst_53 = arith.constant 0.000000e+00 : f32
    %114 = vector.broadcast %cst_52 : f32 to vector<16x1xf32>
    %115 = vector.broadcast %cst_53 : f32 to vector<16x1xf32>
    %116 = arith.select %113, %114, %115 : vector<16x1xi1>, vector<16x1xf32>
    %cst_54 = arith.constant 0.000000e+00 : f32
    %117 = vector.broadcast %cst_54 : f32 to vector<16x1xf32>
    %118 = arith.cmpf ogt, %116, %117 : vector<16x1xf32>
    %119 = vector.broadcast %81 : vector<16x1xf32> to vector<16x128xf32>
    %120 = arith.mulf %66, %119 : vector<16x128xf32>
    %cst_55 = arith.constant 0.000000e+00 : f32
    %121 = vector.shape_cast %118 : vector<16x1xi1> to vector<16x1xi1>
    %122 = vector.broadcast %121 : vector<16x1xi1> to vector<16x128xi1>
    %123 = vector.broadcast %cst_55 : f32 to vector<16x128xf32>
    %124 = arith.select %122, %120, %123 : vector<16x128xi1>, vector<16x128xf32>
    %125 = vector.shape_cast %116 : vector<16x1xf32> to vector<1x16x1xf32>
    %cst_56 = arith.constant dense<0.000000e+00> : vector<1xf32>
    %126 = vector.multi_reduction <add>, %125, %cst_56 [1, 2] : vector<1x16x1xf32> to vector<1xf32>
    %127 = vector.shape_cast %126 : vector<1xf32> to vector<1x1x1xf32>
    %128 = vector.extract %127[0, 0, 0] : f32 from vector<1x1x1xf32>
    %cst_57 = arith.constant dense<0.000000e+00> : vector<128xf32>
    %129 = vector.multi_reduction <add>, %124, %cst_57 [0] : vector<16x128xf32> to vector<128xf32>
    %130 = vector.shape_cast %129 : vector<128xf32> to vector<1x128xf32>
    %cst_58 = arith.constant 1.000000e+00 : f32
    %131 = arith.maximumf %128, %cst_58 : f32
    %132 = vector.broadcast %131 : f32 to vector<1x128xf32>
    %133 = arith.divf %130, %132 : vector<1x128xf32>
    %cst_59 = arith.constant 0.000000e+00 : f32
    %134 = vector.broadcast %cst_59 : f32 to vector<16x1xf32>
    %135 = arith.cmpf ogt, %116, %134 : vector<16x1xf32>
    %cst_60 = arith.constant -1.000000e+30 : f32
    %136 = vector.shape_cast %135 : vector<16x1xi1> to vector<16x1xi1>
    %137 = vector.broadcast %136 : vector<16x1xi1> to vector<16x128xi1>
    %138 = vector.broadcast %cst_60 : f32 to vector<16x128xf32>
    %139 = arith.select %137, %124, %138 : vector<16x128xi1>, vector<16x128xf32>
    %cst_61 = arith.constant dense<0xFF800000> : vector<128xf32>
    %140 = vector.multi_reduction <maximumf>, %139, %cst_61 [0] : vector<16x128xf32> to vector<128xf32>
    %141 = vector.shape_cast %140 : vector<128xf32> to vector<1x128xf32>
    %cst_62 = arith.constant 0.000000e+00 : f32
    %142 = arith.cmpf ogt, %128, %cst_62 : f32
    %cst_63 = arith.constant 0.000000e+00 : f32
    %143 = vector.broadcast %cst_63 : f32 to vector<1x128xf32>
    %144 = arith.select %142, %141, %143 : vector<1x128xf32>
    %145 = tpu.concatenate %144, %133 in 1 : vector<1x128xf32>, vector<1x128xf32> -> vector<1x256xf32>
    %146 = arith.addf %37, %145 : vector<1x256xf32>
    %147 = arith.truncf %116 : vector<16x1xf32> to vector<16x1xbf16>
    %cst_64 = arith.constant dense<0.000000e+00> : vector<16x1xf32>
    %148 = tpu.matmul %1, %147, %cst_64 {dimension_numbers = #tpu.dot_dimension_numbers<[1], [0], [0], [1], [0, 0, 1, 1], [], []>} : vector<16x16xbf16>, vector<16x1xbf16>, vector<16x1xf32> -> vector<16x1xf32>
    %cst_65 = arith.constant 1.000000e+00 : f32
    %149 = vector.broadcast %cst_65 : f32 to vector<16x1xf32>
    %150 = arith.addf %148, %149 : vector<16x1xf32>
    %151 = arith.mulf %116, %150 : vector<16x1xf32>
    %cst_66 = arith.constant 0.000000e+00 : f32
    %152 = vector.broadcast %cst_66 : f32 to vector<16x1xf32>
    %153 = arith.cmpf ogt, %151, %152 : vector<16x1xf32>
    %154 = math.rsqrt %151 : vector<16x1xf32>
    %cst_67 = arith.constant 0.000000e+00 : f32
    %155 = vector.broadcast %cst_67 : f32 to vector<16x1xf32>
    %156 = arith.select %153, %154, %155 : vector<16x1xi1>, vector<16x1xf32>
    %157 = arith.mulf %116, %156 : vector<16x1xf32>
    %c1 = arith.constant 1 : index
    %c0_68 = arith.constant 0 : index
    %c0_69 = arith.constant 0 : index
    %158 = vector.load %arg9[%c1, %c0_68, %c0_69] : memref<3x128x128xbf16, #tpu.memory_space<vmem>>, vector<1x128x128xbf16>
    %159 = vector.shape_cast %158 : vector<1x128x128xbf16> to vector<128x128xbf16>
    %c1_70 = arith.constant 1 : index
    %c0_71 = arith.constant 0 : index
    %c0_72 = arith.constant 0 : index
    %160 = vector.load %arg10[%c1_70, %c0_71, %c0_72] : memref<3x1x128xf32, #tpu.memory_space<vmem>>, vector<1x1x128xf32>
    %161 = vector.shape_cast %160 : vector<1x1x128xf32> to vector<1x128xf32>
    %162 = arith.truncf %124 : vector<16x128xf32> to vector<16x128xbf16>
    %cst_73 = arith.constant dense<0.000000e+00> : vector<16x128xf32>
    %163 = tpu.matmul %162, %159, %cst_73 {dimension_numbers = #tpu.dot_dimension_numbers<[1], [0], [0], [1], [0, 0, 1, 1], [], []>} : vector<16x128xbf16>, vector<128x128xbf16>, vector<16x128xf32> -> vector<16x128xf32>
    %164 = vector.broadcast %157 : vector<16x1xf32> to vector<16x128xf32>
    %165 = arith.mulf %164, %163 : vector<16x128xf32>
    %166 = arith.truncf %165 : vector<16x128xf32> to vector<16x128xbf16>
    %cst_74 = arith.constant dense<0.000000e+00> : vector<16x128xf32>
    %167 = tpu.matmul %1, %166, %cst_74 {dimension_numbers = #tpu.dot_dimension_numbers<[1], [0], [0], [1], [0, 0, 1, 1], [], []>} : vector<16x16xbf16>, vector<16x128xbf16>, vector<16x128xf32> -> vector<16x128xf32>
    %168 = vector.broadcast %157 : vector<16x1xf32> to vector<16x128xf32>
    %169 = arith.mulf %168, %167 : vector<16x128xf32>
    %170 = arith.mulf %157, %157 : vector<16x1xf32>
    %171 = vector.broadcast %170 : vector<16x1xf32> to vector<16x128xf32>
    %172 = arith.mulf %171, %163 : vector<16x128xf32>
    %173 = arith.addf %169, %172 : vector<16x128xf32>
    %174 = vector.broadcast %161 : vector<1x128xf32> to vector<16x128xf32>
    %175 = arith.addf %173, %174 : vector<16x128xf32>
    %c1_75 = arith.constant 1 : index
    %c0_76 = arith.constant 0 : index
    %c0_77 = arith.constant 0 : index
    %176 = vector.load %arg11[%c1_75, %c0_76, %c0_77] : memref<3x128x128xbf16, #tpu.memory_space<vmem>>, vector<1x128x128xbf16>
    %177 = vector.shape_cast %176 : vector<1x128x128xbf16> to vector<128x128xbf16>
    %c1_78 = arith.constant 1 : index
    %c0_79 = arith.constant 0 : index
    %c0_80 = arith.constant 0 : index
    %178 = vector.load %arg12[%c1_78, %c0_79, %c0_80] : memref<3x1x128xf32, #tpu.memory_space<vmem>>, vector<1x1x128xf32>
    %179 = vector.shape_cast %178 : vector<1x1x128xf32> to vector<1x128xf32>
    %180 = arith.truncf %175 : vector<16x128xf32> to vector<16x128xbf16>
    %cst_81 = arith.constant dense<0.000000e+00> : vector<16x128xf32>
    %181 = tpu.matmul %180, %177, %cst_81 {dimension_numbers = #tpu.dot_dimension_numbers<[1], [0], [0], [1], [0, 0, 1, 1], [], []>} : vector<16x128xbf16>, vector<128x128xbf16>, vector<16x128xf32> -> vector<16x128xf32>
    %182 = vector.broadcast %179 : vector<1x128xf32> to vector<16x128xf32>
    %183 = arith.addf %181, %182 : vector<16x128xf32>
    %cst_82 = arith.constant 0.000000e+00 : f32
    %184 = vector.broadcast %cst_82 : f32 to vector<16x128xf32>
    %185 = arith.maximumf %183, %184 : vector<16x128xf32>
    %186 = arith.addf %185, %10 : vector<16x128xf32>
    %c1_83 = arith.constant 1 : index
    %c0_84 = arith.constant 0 : index
    %c0_85 = arith.constant 0 : index
    %187 = vector.load %arg13[%c1_83, %c0_84, %c0_85] : memref<3x1x128xf32, #tpu.memory_space<vmem>>, vector<1x1x128xf32>
    %188 = vector.shape_cast %187 : vector<1x1x128xf32> to vector<1x128xf32>
    %189 = arith.mulf %188, %188 : vector<1x128xf32>
    %190 = vector.shape_cast %189 : vector<1x128xf32> to vector<1x1x128xf32>
    %cst_86 = arith.constant dense<0.000000e+00> : vector<1xf32>
    %191 = vector.multi_reduction <add>, %190, %cst_86 [1, 2] : vector<1x1x128xf32> to vector<1xf32>
    %192 = vector.shape_cast %191 : vector<1xf32> to vector<1x1x1xf32>
    %193 = vector.extract %192[0, 0, 0] : f32 from vector<1x1x1xf32>
    %194 = math.rsqrt %193 : f32
    %195 = vector.broadcast %188 : vector<1x128xf32> to vector<16x128xf32>
    %196 = arith.mulf %186, %195 : vector<16x128xf32>
    %cst_87 = arith.constant dense<0.000000e+00> : vector<16xf32>
    %197 = vector.multi_reduction <add>, %196, %cst_87 [1] : vector<16x128xf32> to vector<16xf32>
    %198 = vector.shape_cast %197 : vector<16xf32> to vector<16x1xf32>
    %199 = vector.broadcast %194 : f32 to vector<16x1xf32>
    %200 = arith.mulf %198, %199 : vector<16x1xf32>
    %201 = math.tanh %200 : vector<16x1xf32>
    %cst_88 = arith.constant 0.000000e+00 : f32
    %202 = vector.broadcast %cst_88 : f32 to vector<16x1xf32>
    %203 = arith.cmpf ogt, %116, %202 : vector<16x1xf32>
    %cst_89 = arith.constant -1.000000e+30 : f32
    %204 = vector.broadcast %cst_89 : f32 to vector<16x1xf32>
    %205 = arith.select %203, %201, %204 : vector<16x1xi1>, vector<16x1xf32>
    %206 = tpu.transpose %205, [1, 0] : vector<16x1xf32> -> vector<1x16xf32>
    %207 = tpu.iota {dimensions = array<i32: 1>} : vector<16x16xi32>
    %208 = tpu.iota {dimensions = array<i32: 0>} : vector<16x16xi32>
    %209 = vector.broadcast %206 : vector<1x16xf32> to vector<16x16xf32>
    %210 = vector.broadcast %205 : vector<16x1xf32> to vector<16x16xf32>
    %211 = arith.cmpf ogt, %209, %210 : vector<16x16xf32>
    %212 = vector.broadcast %206 : vector<1x16xf32> to vector<16x16xf32>
    %213 = vector.broadcast %205 : vector<16x1xf32> to vector<16x16xf32>
    %214 = arith.cmpf oeq, %212, %213 : vector<16x16xf32>
    %215 = arith.cmpi slt, %207, %208 : vector<16x16xi32>
    %216 = arith.andi %214, %215 : vector<16x16xi1>
    %217 = arith.ori %211, %216 : vector<16x16xi1>
    %cst_90 = arith.constant 1.000000e+00 : f32
    %cst_91 = arith.constant 0.000000e+00 : f32
    %218 = vector.broadcast %cst_90 : f32 to vector<16x16xf32>
    %219 = vector.broadcast %cst_91 : f32 to vector<16x16xf32>
    %220 = arith.select %217, %218, %219 : vector<16x16xi1>, vector<16x16xf32>
    %cst_92 = arith.constant dense<0.000000e+00> : vector<16xf32>
    %221 = vector.multi_reduction <add>, %220, %cst_92 [1] : vector<16x16xf32> to vector<16xf32>
    %222 = vector.shape_cast %221 : vector<16xf32> to vector<16x1xf32>
    %223 = vector.shape_cast %116 : vector<16x1xf32> to vector<1x16x1xf32>
    %cst_93 = arith.constant dense<0.000000e+00> : vector<1xf32>
    %224 = vector.multi_reduction <add>, %223, %cst_93 [1, 2] : vector<1x16x1xf32> to vector<1xf32>
    %225 = vector.shape_cast %224 : vector<1xf32> to vector<1x1x1xf32>
    %226 = vector.extract %225[0, 0, 0] : f32 from vector<1x1x1xf32>
    %cst_94 = arith.constant 5.000000e-01 : f32
    %227 = arith.mulf %cst_94, %226 : f32
    %228 = math.ceil %227 : f32
    %cst_95 = arith.constant 0.000000e+00 : f32
    %229 = vector.broadcast %cst_95 : f32 to vector<16x1xf32>
    %230 = arith.cmpf ogt, %116, %229 : vector<16x1xf32>
    %231 = vector.broadcast %228 : f32 to vector<16x1xf32>
    %232 = arith.cmpf olt, %222, %231 : vector<16x1xf32>
    %233 = arith.andi %230, %232 : vector<16x1xi1>
    %cst_96 = arith.constant 1.000000e+00 : f32
    %cst_97 = arith.constant 0.000000e+00 : f32
    %234 = vector.broadcast %cst_96 : f32 to vector<16x1xf32>
    %235 = vector.broadcast %cst_97 : f32 to vector<16x1xf32>
    %236 = arith.select %233, %234, %235 : vector<16x1xi1>, vector<16x1xf32>
    %cst_98 = arith.constant 0.000000e+00 : f32
    %237 = vector.broadcast %cst_98 : f32 to vector<16x1xf32>
    %238 = arith.cmpf ogt, %236, %237 : vector<16x1xf32>
    %239 = vector.broadcast %201 : vector<16x1xf32> to vector<16x128xf32>
    %240 = arith.mulf %186, %239 : vector<16x128xf32>
    %cst_99 = arith.constant 0.000000e+00 : f32
    %241 = vector.shape_cast %238 : vector<16x1xi1> to vector<16x1xi1>
    %242 = vector.broadcast %241 : vector<16x1xi1> to vector<16x128xi1>
    %243 = vector.broadcast %cst_99 : f32 to vector<16x128xf32>
    %244 = arith.select %242, %240, %243 : vector<16x128xi1>, vector<16x128xf32>
    %245 = vector.shape_cast %236 : vector<16x1xf32> to vector<1x16x1xf32>
    %cst_100 = arith.constant dense<0.000000e+00> : vector<1xf32>
    %246 = vector.multi_reduction <add>, %245, %cst_100 [1, 2] : vector<1x16x1xf32> to vector<1xf32>
    %247 = vector.shape_cast %246 : vector<1xf32> to vector<1x1x1xf32>
    %248 = vector.extract %247[0, 0, 0] : f32 from vector<1x1x1xf32>
    %cst_101 = arith.constant dense<0.000000e+00> : vector<128xf32>
    %249 = vector.multi_reduction <add>, %244, %cst_101 [0] : vector<16x128xf32> to vector<128xf32>
    %250 = vector.shape_cast %249 : vector<128xf32> to vector<1x128xf32>
    %cst_102 = arith.constant 1.000000e+00 : f32
    %251 = arith.maximumf %248, %cst_102 : f32
    %252 = vector.broadcast %251 : f32 to vector<1x128xf32>
    %253 = arith.divf %250, %252 : vector<1x128xf32>
    %cst_103 = arith.constant 0.000000e+00 : f32
    %254 = vector.broadcast %cst_103 : f32 to vector<16x1xf32>
    %255 = arith.cmpf ogt, %236, %254 : vector<16x1xf32>
    %cst_104 = arith.constant -1.000000e+30 : f32
    %256 = vector.shape_cast %255 : vector<16x1xi1> to vector<16x1xi1>
    %257 = vector.broadcast %256 : vector<16x1xi1> to vector<16x128xi1>
    %258 = vector.broadcast %cst_104 : f32 to vector<16x128xf32>
    %259 = arith.select %257, %244, %258 : vector<16x128xi1>, vector<16x128xf32>
    %cst_105 = arith.constant dense<0xFF800000> : vector<128xf32>
    %260 = vector.multi_reduction <maximumf>, %259, %cst_105 [0] : vector<16x128xf32> to vector<128xf32>
    %261 = vector.shape_cast %260 : vector<128xf32> to vector<1x128xf32>
    %cst_106 = arith.constant 0.000000e+00 : f32
    %262 = arith.cmpf ogt, %248, %cst_106 : f32
    %cst_107 = arith.constant 0.000000e+00 : f32
    %263 = vector.broadcast %cst_107 : f32 to vector<1x128xf32>
    %264 = arith.select %262, %261, %263 : vector<1x128xf32>
    %265 = tpu.concatenate %264, %253 in 1 : vector<1x128xf32>, vector<1x128xf32> -> vector<1x256xf32>
    %266 = arith.addf %146, %265 : vector<1x256xf32>
    %267 = arith.truncf %236 : vector<16x1xf32> to vector<16x1xbf16>
    %cst_108 = arith.constant dense<0.000000e+00> : vector<16x1xf32>
    %268 = tpu.matmul %1, %267, %cst_108 {dimension_numbers = #tpu.dot_dimension_numbers<[1], [0], [0], [1], [0, 0, 1, 1], [], []>} : vector<16x16xbf16>, vector<16x1xbf16>, vector<16x1xf32> -> vector<16x1xf32>
    %cst_109 = arith.constant 1.000000e+00 : f32
    %269 = vector.broadcast %cst_109 : f32 to vector<16x1xf32>
    %270 = arith.addf %268, %269 : vector<16x1xf32>
    %271 = arith.mulf %236, %270 : vector<16x1xf32>
    %cst_110 = arith.constant 0.000000e+00 : f32
    %272 = vector.broadcast %cst_110 : f32 to vector<16x1xf32>
    %273 = arith.cmpf ogt, %271, %272 : vector<16x1xf32>
    %274 = math.rsqrt %271 : vector<16x1xf32>
    %cst_111 = arith.constant 0.000000e+00 : f32
    %275 = vector.broadcast %cst_111 : f32 to vector<16x1xf32>
    %276 = arith.select %273, %274, %275 : vector<16x1xi1>, vector<16x1xf32>
    %277 = arith.mulf %236, %276 : vector<16x1xf32>
    %c2 = arith.constant 2 : index
    %c0_112 = arith.constant 0 : index
    %c0_113 = arith.constant 0 : index
    %278 = vector.load %arg9[%c2, %c0_112, %c0_113] : memref<3x128x128xbf16, #tpu.memory_space<vmem>>, vector<1x128x128xbf16>
    %279 = vector.shape_cast %278 : vector<1x128x128xbf16> to vector<128x128xbf16>
    %c2_114 = arith.constant 2 : index
    %c0_115 = arith.constant 0 : index
    %c0_116 = arith.constant 0 : index
    %280 = vector.load %arg10[%c2_114, %c0_115, %c0_116] : memref<3x1x128xf32, #tpu.memory_space<vmem>>, vector<1x1x128xf32>
    %281 = vector.shape_cast %280 : vector<1x1x128xf32> to vector<1x128xf32>
    %282 = arith.truncf %244 : vector<16x128xf32> to vector<16x128xbf16>
    %cst_117 = arith.constant dense<0.000000e+00> : vector<16x128xf32>
    %283 = tpu.matmul %282, %279, %cst_117 {dimension_numbers = #tpu.dot_dimension_numbers<[1], [0], [0], [1], [0, 0, 1, 1], [], []>} : vector<16x128xbf16>, vector<128x128xbf16>, vector<16x128xf32> -> vector<16x128xf32>
    %284 = vector.broadcast %277 : vector<16x1xf32> to vector<16x128xf32>
    %285 = arith.mulf %284, %283 : vector<16x128xf32>
    %286 = arith.truncf %285 : vector<16x128xf32> to vector<16x128xbf16>
    %cst_118 = arith.constant dense<0.000000e+00> : vector<16x128xf32>
    %287 = tpu.matmul %1, %286, %cst_118 {dimension_numbers = #tpu.dot_dimension_numbers<[1], [0], [0], [1], [0, 0, 1, 1], [], []>} : vector<16x16xbf16>, vector<16x128xbf16>, vector<16x128xf32> -> vector<16x128xf32>
    %288 = vector.broadcast %277 : vector<16x1xf32> to vector<16x128xf32>
    %289 = arith.mulf %288, %287 : vector<16x128xf32>
    %290 = arith.mulf %277, %277 : vector<16x1xf32>
    %291 = vector.broadcast %290 : vector<16x1xf32> to vector<16x128xf32>
    %292 = arith.mulf %291, %283 : vector<16x128xf32>
    %293 = arith.addf %289, %292 : vector<16x128xf32>
    %294 = vector.broadcast %281 : vector<1x128xf32> to vector<16x128xf32>
    %295 = arith.addf %293, %294 : vector<16x128xf32>
    %c2_119 = arith.constant 2 : index
    %c0_120 = arith.constant 0 : index
    %c0_121 = arith.constant 0 : index
    %296 = vector.load %arg11[%c2_119, %c0_120, %c0_121] : memref<3x128x128xbf16, #tpu.memory_space<vmem>>, vector<1x128x128xbf16>
    %297 = vector.shape_cast %296 : vector<1x128x128xbf16> to vector<128x128xbf16>
    %c2_122 = arith.constant 2 : index
    %c0_123 = arith.constant 0 : index
    %c0_124 = arith.constant 0 : index
    %298 = vector.load %arg12[%c2_122, %c0_123, %c0_124] : memref<3x1x128xf32, #tpu.memory_space<vmem>>, vector<1x1x128xf32>
    %299 = vector.shape_cast %298 : vector<1x1x128xf32> to vector<1x128xf32>
    %300 = arith.truncf %295 : vector<16x128xf32> to vector<16x128xbf16>
    %cst_125 = arith.constant dense<0.000000e+00> : vector<16x128xf32>
    %301 = tpu.matmul %300, %297, %cst_125 {dimension_numbers = #tpu.dot_dimension_numbers<[1], [0], [0], [1], [0, 0, 1, 1], [], []>} : vector<16x128xbf16>, vector<128x128xbf16>, vector<16x128xf32> -> vector<16x128xf32>
    %302 = vector.broadcast %299 : vector<1x128xf32> to vector<16x128xf32>
    %303 = arith.addf %301, %302 : vector<16x128xf32>
    %cst_126 = arith.constant 0.000000e+00 : f32
    %304 = vector.broadcast %cst_126 : f32 to vector<16x128xf32>
    %305 = arith.maximumf %303, %304 : vector<16x128xf32>
    %306 = arith.addf %305, %10 : vector<16x128xf32>
    %c2_127 = arith.constant 2 : index
    %c0_128 = arith.constant 0 : index
    %c0_129 = arith.constant 0 : index
    %307 = vector.load %arg13[%c2_127, %c0_128, %c0_129] : memref<3x1x128xf32, #tpu.memory_space<vmem>>, vector<1x1x128xf32>
    %308 = vector.shape_cast %307 : vector<1x1x128xf32> to vector<1x128xf32>
    %309 = arith.mulf %308, %308 : vector<1x128xf32>
    %310 = vector.shape_cast %309 : vector<1x128xf32> to vector<1x1x128xf32>
    %cst_130 = arith.constant dense<0.000000e+00> : vector<1xf32>
    %311 = vector.multi_reduction <add>, %310, %cst_130 [1, 2] : vector<1x1x128xf32> to vector<1xf32>
    %312 = vector.shape_cast %311 : vector<1xf32> to vector<1x1x1xf32>
    %313 = vector.extract %312[0, 0, 0] : f32 from vector<1x1x1xf32>
    %314 = math.rsqrt %313 : f32
    %315 = vector.broadcast %308 : vector<1x128xf32> to vector<16x128xf32>
    %316 = arith.mulf %306, %315 : vector<16x128xf32>
    %cst_131 = arith.constant dense<0.000000e+00> : vector<16xf32>
    %317 = vector.multi_reduction <add>, %316, %cst_131 [1] : vector<16x128xf32> to vector<16xf32>
    %318 = vector.shape_cast %317 : vector<16xf32> to vector<16x1xf32>
    %319 = vector.broadcast %314 : f32 to vector<16x1xf32>
    %320 = arith.mulf %318, %319 : vector<16x1xf32>
    %321 = math.tanh %320 : vector<16x1xf32>
    %cst_132 = arith.constant 0.000000e+00 : f32
    %322 = vector.broadcast %cst_132 : f32 to vector<16x1xf32>
    %323 = arith.cmpf ogt, %236, %322 : vector<16x1xf32>
    %cst_133 = arith.constant -1.000000e+30 : f32
    %324 = vector.broadcast %cst_133 : f32 to vector<16x1xf32>
    %325 = arith.select %323, %321, %324 : vector<16x1xi1>, vector<16x1xf32>
    %326 = tpu.transpose %325, [1, 0] : vector<16x1xf32> -> vector<1x16xf32>
    %327 = tpu.iota {dimensions = array<i32: 1>} : vector<16x16xi32>
    %328 = tpu.iota {dimensions = array<i32: 0>} : vector<16x16xi32>
    %329 = vector.broadcast %326 : vector<1x16xf32> to vector<16x16xf32>
    %330 = vector.broadcast %325 : vector<16x1xf32> to vector<16x16xf32>
    %331 = arith.cmpf ogt, %329, %330 : vector<16x16xf32>
    %332 = vector.broadcast %326 : vector<1x16xf32> to vector<16x16xf32>
    %333 = vector.broadcast %325 : vector<16x1xf32> to vector<16x16xf32>
    %334 = arith.cmpf oeq, %332, %333 : vector<16x16xf32>
    %335 = arith.cmpi slt, %327, %328 : vector<16x16xi32>
    %336 = arith.andi %334, %335 : vector<16x16xi1>
    %337 = arith.ori %331, %336 : vector<16x16xi1>
    %cst_134 = arith.constant 1.000000e+00 : f32
    %cst_135 = arith.constant 0.000000e+00 : f32
    %338 = vector.broadcast %cst_134 : f32 to vector<16x16xf32>
    %339 = vector.broadcast %cst_135 : f32 to vector<16x16xf32>
    %340 = arith.select %337, %338, %339 : vector<16x16xi1>, vector<16x16xf32>
    %cst_136 = arith.constant dense<0.000000e+00> : vector<16xf32>
    %341 = vector.multi_reduction <add>, %340, %cst_136 [1] : vector<16x16xf32> to vector<16xf32>
    %342 = vector.shape_cast %341 : vector<16xf32> to vector<16x1xf32>
    %343 = vector.shape_cast %236 : vector<16x1xf32> to vector<1x16x1xf32>
    %cst_137 = arith.constant dense<0.000000e+00> : vector<1xf32>
    %344 = vector.multi_reduction <add>, %343, %cst_137 [1, 2] : vector<1x16x1xf32> to vector<1xf32>
    %345 = vector.shape_cast %344 : vector<1xf32> to vector<1x1x1xf32>
    %346 = vector.extract %345[0, 0, 0] : f32 from vector<1x1x1xf32>
    %cst_138 = arith.constant 5.000000e-01 : f32
    %347 = arith.mulf %cst_138, %346 : f32
    %348 = math.ceil %347 : f32
    %cst_139 = arith.constant 0.000000e+00 : f32
    %349 = vector.broadcast %cst_139 : f32 to vector<16x1xf32>
    %350 = arith.cmpf ogt, %236, %349 : vector<16x1xf32>
    %351 = vector.broadcast %348 : f32 to vector<16x1xf32>
    %352 = arith.cmpf olt, %342, %351 : vector<16x1xf32>
    %353 = arith.andi %350, %352 : vector<16x1xi1>
    %cst_140 = arith.constant 1.000000e+00 : f32
    %cst_141 = arith.constant 0.000000e+00 : f32
    %354 = vector.broadcast %cst_140 : f32 to vector<16x1xf32>
    %355 = vector.broadcast %cst_141 : f32 to vector<16x1xf32>
    %356 = arith.select %353, %354, %355 : vector<16x1xi1>, vector<16x1xf32>
    %cst_142 = arith.constant 0.000000e+00 : f32
    %357 = vector.broadcast %cst_142 : f32 to vector<16x1xf32>
    %358 = arith.cmpf ogt, %356, %357 : vector<16x1xf32>
    %359 = vector.broadcast %321 : vector<16x1xf32> to vector<16x128xf32>
    %360 = arith.mulf %306, %359 : vector<16x128xf32>
    %cst_143 = arith.constant 0.000000e+00 : f32
    %361 = vector.shape_cast %358 : vector<16x1xi1> to vector<16x1xi1>
    %362 = vector.broadcast %361 : vector<16x1xi1> to vector<16x128xi1>
    %363 = vector.broadcast %cst_143 : f32 to vector<16x128xf32>
    %364 = arith.select %362, %360, %363 : vector<16x128xi1>, vector<16x128xf32>
    %365 = vector.shape_cast %356 : vector<16x1xf32> to vector<1x16x1xf32>
    %cst_144 = arith.constant dense<0.000000e+00> : vector<1xf32>
    %366 = vector.multi_reduction <add>, %365, %cst_144 [1, 2] : vector<1x16x1xf32> to vector<1xf32>
    %367 = vector.shape_cast %366 : vector<1xf32> to vector<1x1x1xf32>
    %368 = vector.extract %367[0, 0, 0] : f32 from vector<1x1x1xf32>
    %cst_145 = arith.constant dense<0.000000e+00> : vector<128xf32>
    %369 = vector.multi_reduction <add>, %364, %cst_145 [0] : vector<16x128xf32> to vector<128xf32>
    %370 = vector.shape_cast %369 : vector<128xf32> to vector<1x128xf32>
    %cst_146 = arith.constant 1.000000e+00 : f32
    %371 = arith.maximumf %368, %cst_146 : f32
    %372 = vector.broadcast %371 : f32 to vector<1x128xf32>
    %373 = arith.divf %370, %372 : vector<1x128xf32>
    %cst_147 = arith.constant 0.000000e+00 : f32
    %374 = vector.broadcast %cst_147 : f32 to vector<16x1xf32>
    %375 = arith.cmpf ogt, %356, %374 : vector<16x1xf32>
    %cst_148 = arith.constant -1.000000e+30 : f32
    %376 = vector.shape_cast %375 : vector<16x1xi1> to vector<16x1xi1>
    %377 = vector.broadcast %376 : vector<16x1xi1> to vector<16x128xi1>
    %378 = vector.broadcast %cst_148 : f32 to vector<16x128xf32>
    %379 = arith.select %377, %364, %378 : vector<16x128xi1>, vector<16x128xf32>
    %cst_149 = arith.constant dense<0xFF800000> : vector<128xf32>
    %380 = vector.multi_reduction <maximumf>, %379, %cst_149 [0] : vector<16x128xf32> to vector<128xf32>
    %381 = vector.shape_cast %380 : vector<128xf32> to vector<1x128xf32>
    %cst_150 = arith.constant 0.000000e+00 : f32
    %382 = arith.cmpf ogt, %368, %cst_150 : f32
    %cst_151 = arith.constant 0.000000e+00 : f32
    %383 = vector.broadcast %cst_151 : f32 to vector<1x128xf32>
    %384 = arith.select %382, %381, %383 : vector<1x128xf32>
    %385 = tpu.concatenate %384, %373 in 1 : vector<1x128xf32>, vector<1x128xf32> -> vector<1x256xf32>
    %386 = arith.addf %266, %385 : vector<1x256xf32>
    %387 = vector.shape_cast %386 : vector<1x256xf32> to vector<1x256xf32>
    %388 = vector.broadcast %387 : vector<1x256xf32> to vector<8x256xf32>
    %c0_152 = arith.constant 0 : index
    %c0_153 = arith.constant 0 : index
    %c0_154 = arith.constant 0 : index
    %389 = vector.load %arg14[%c0_152, %c0_153, %c0_154] : memref<1x8x256xf32, #tpu.memory_space<vmem>>, vector<1x8x256xf32>
    %390 = vector.shape_cast %389 : vector<1x8x256xf32> to vector<8x256xf32>
    %391 = vector.shape_cast %388 : vector<8x256xf32> to vector<1x8x256xf32>
    tpu.vector_store %arg14[%c0_152, %c0_153, %c0_154], %391 {strides = array<i32>} : memref<1x8x256xf32, #tpu.memory_space<vmem>>, vector<1x8x256xf32>,
    return
  }
  func.func @transform_0(%arg0: i32) -> (i32, i32, i32) {
    %c0_i32 = arith.constant 0 : i32
    %c0_i32_0 = arith.constant 0 : i32
    %c0_i32_1 = arith.constant 0 : i32
    return %arg0, %c0_i32, %c0_i32_0 : i32, i32, i32
  }
  func.func @transform_1(%arg0: i32) -> (i32, i32, i32) {
    %c0_i32 = arith.constant 0 : i32
    %c0_i32_0 = arith.constant 0 : i32
    %c0_i32_1 = arith.constant 0 : i32
    return %arg0, %c0_i32, %c0_i32_0 : i32, i32, i32
  }
  func.func @transform_2(%arg0: i32) -> (i32, i32, i32) {
    %c0_i32 = arith.constant 0 : i32
    %c0_i32_0 = arith.constant 0 : i32
    %c0_i32_1 = arith.constant 0 : i32
    return %arg0, %c0_i32, %c0_i32_0 : i32, i32, i32
  }
  func.func @transform_3(%arg0: i32) -> (i32, i32) {
    %c0_i32 = arith.constant 0 : i32
    %c0_i32_0 = arith.constant 0 : i32
    %c0_i32_1 = arith.constant 0 : i32
    return %c0_i32, %c0_i32_0 : i32, i32
  }
  func.func @transform_4(%arg0: i32) -> (i32, i32) {
    %c0_i32 = arith.constant 0 : i32
    %c0_i32_0 = arith.constant 0 : i32
    %c0_i32_1 = arith.constant 0 : i32
    return %c0_i32, %c0_i32_0 : i32, i32
  }
  func.func @transform_5(%arg0: i32) -> (i32, i32) {
    %c0_i32 = arith.constant 0 : i32
    %c0_i32_0 = arith.constant 0 : i32
    %c0_i32_1 = arith.constant 0 : i32
    return %c0_i32, %c0_i32_0 : i32, i32
  }
  func.func @transform_6(%arg0: i32) -> (i32, i32) {
    %c0_i32 = arith.constant 0 : i32
    %c0_i32_0 = arith.constant 0 : i32
    %c0_i32_1 = arith.constant 0 : i32
    return %c0_i32, %c0_i32_0 : i32, i32
  }
  func.func @transform_7(%arg0: i32) -> (i32, i32) {
    %c0_i32 = arith.constant 0 : i32
    %c0_i32_0 = arith.constant 0 : i32
    %c0_i32_1 = arith.constant 0 : i32
    return %c0_i32, %c0_i32_0 : i32, i32
  }
  func.func @transform_8(%arg0: i32) -> (i32, i32, i32) {
    %c0_i32 = arith.constant 0 : i32
    %c0_i32_0 = arith.constant 0 : i32
    %c0_i32_1 = arith.constant 0 : i32
    %c0_i32_2 = arith.constant 0 : i32
    return %c0_i32, %c0_i32_0, %c0_i32_1 : i32, i32, i32
  }
  func.func @transform_9(%arg0: i32) -> (i32, i32, i32) {
    %c0_i32 = arith.constant 0 : i32
    %c0_i32_0 = arith.constant 0 : i32
    %c0_i32_1 = arith.constant 0 : i32
    %c0_i32_2 = arith.constant 0 : i32
    return %c0_i32, %c0_i32_0, %c0_i32_1 : i32, i32, i32
  }
  func.func @transform_10(%arg0: i32) -> (i32, i32, i32) {
    %c0_i32 = arith.constant 0 : i32
    %c0_i32_0 = arith.constant 0 : i32
    %c0_i32_1 = arith.constant 0 : i32
    %c0_i32_2 = arith.constant 0 : i32
    return %c0_i32, %c0_i32_0, %c0_i32_1 : i32, i32, i32
  }
  func.func @transform_11(%arg0: i32) -> (i32, i32, i32) {
    %c0_i32 = arith.constant 0 : i32
    %c0_i32_0 = arith.constant 0 : i32
    %c0_i32_1 = arith.constant 0 : i32
    %c0_i32_2 = arith.constant 0 : i32
    return %c0_i32, %c0_i32_0, %c0_i32_1 : i32, i32, i32
  }
  func.func @transform_12(%arg0: i32) -> (i32, i32, i32) {
    %c0_i32 = arith.constant 0 : i32
    %c0_i32_0 = arith.constant 0 : i32
    %c0_i32_1 = arith.constant 0 : i32
    %c0_i32_2 = arith.constant 0 : i32
    return %c0_i32, %c0_i32_0, %c0_i32_1 : i32, i32, i32
  }
  func.func @transform_13(%arg0: i32) -> (i32, i32, i32) {
    %c0_i32 = arith.constant 0 : i32
    %c0_i32_0 = arith.constant 0 : i32
    %c0_i32_1 = arith.constant 0 : i32
    return %arg0, %c0_i32, %c0_i32_0 : i32, i32, i32
  }
}

</mosaic_0001>

<bundles_post_ra>
// kernel: protein_dna_gnn_forward.1
= control target key start
LH: loop header
LB: loop body
LE: loop exit
PB: predicated region body
PF: predicated region fallthrough
CT: control target
= control target key end

     0   :  { %s3095_s25 = smov 0   ;;  %s3746_s0 = inlined_call_operand.vmem [shape: bf16[2,16,16], index: 0, kind: input, shape index: {}]   ;;  %s3747_s1 = inlined_call_operand.vmem [shape: bf16[2,16,128], index: 1, kind: input, shape index: {}]   ;;  %s3748_s2 = inlined_call_operand.vmem [shape: f32[2,16,1], index: 2, kind: input, shape index: {}]   ;;  %s3749_s3 = inlined_call_operand.vmem [shape: bf16[128,128], index: 3, kind: input, shape index: {}]   ;;  %s3750_s4 = inlined_call_operand.vmem [shape: f32[1,128], index: 4, kind: input, shape index: {}]   ;;  %s3751_s5 = inlined_call_operand.vmem [shape: bf16[128,128], index: 5, kind: input, shape index: {}]   ;;  %s3752_s6 = inlined_call_operand.vmem [shape: f32[1,128], index: 6, kind: input, shape index: {}]   ;;  %s3753_s7 = inlined_call_operand.vmem [shape: f32[1,128], index: 7, kind: input, shape index: {}]   ;;  %s3754_s8 = inlined_call_operand.vmem [shape: bf16[3,128,128], index: 8, kind: input, shape index: {}]   ;;  %s3755_s9 = inlined_call_operand.vmem [shape: f32[3,1,128], index: 9, kind: input, shape index: {}]   ;;  %s3756_s10 = inlined_call_operand.vmem [shape: bf16[3,128,128], index: 10, kind: input, shape index: {}]   ;;  %s3757_s11 = inlined_call_operand.vmem [shape: f32[3,1,128], index: 11, kind: input, shape index: {}]   ;;  %s3758_s12 = inlined_call_operand.vmem [shape: f32[3,1,128], index: 12, kind: input, shape index: {}]   ;;  %s3759_s13 = inlined_call_operand.vmem [shape: f32[2,8,256], index: 13, kind: output, shape index: {}]  }
   0x1 LB: > { %s2415_s26 = sadd.s32 4294967295, %s3018_s25   ;;  %p2419_p0 = scmp.ge.s32.totalorder %s3018_s25, 1  ;;  %s3018_s25 = sphi %s3095_s25, %s23_s25  }
   0x2   : > { %p407_p1 = scmp.lt.s32.totalorder %s3018_s25, 3 }
   0x4   : > { %p408_p2 = pnand %p2419_p0, %p407_p1 }
   0x5   : > { %v2912_v0 = vld [vmem:[%s3749_s3] sm:$0xff] (!%p408_p2)   ;;  %v3020_v1 = vmov (!%p408_p2), 0.0   ;;  %v2913_v2 = vld [vmem:[%s3749_s3 + $0x8] sm:$0xff] (!%p408_p2)   ;;  %vm3021_vm0 = vmmov (!%p408_p2), 0   ;;  %p461_p3 = scmp.lt.s32.totalorder (!%p408_p2), %s2415_s26, 1  ;;  %v3022_v3 = vmov (!%p408_p2), 0  }
   0x6   : > { %411 = sbr.rel (%p408_p2) target bundleno = 4641 (0x1221), region = 72  ;;  %2681 = vmatprep.subr.bf16.mxu0 (!%p408_p2), %v3020_v1  ;;  %2707 = vmatprep.subr.bf16.mxu1 (!%p408_p2), %v3020_v1  ;;  %v2914_v4 = vld [vmem:[%s3749_s3 + $0x10] sm:$0xff] (!%p408_p2)   ;;  %v2915_v5 = vld [vmem:[%s3749_s3 + $0x18] sm:$0xff] (!%p408_p2)   ;;  %v2916_v7 = vld [vmem:[%s3749_s3 + $0x20] sm:$0xff] (!%p408_p2)   ;;  %vm631_vm1 = vcmask (!%p408_p2), 130048   ;;  %vm1103_vm2 = vcmask (!%p408_p2), 1040384  }
   0x7   : > { %2682 = vmatpush3.bf16.msra.mxu0 (!%p408_p2), %v2912_v0  ;;  %2697 = vmatprep.mubr.msk.bf16.mxu0 (!%p408_p2), %vm3021_vm0, %v3020_v1  ;;  %v2917_v11 = vld [vmem:[%s3749_s3 + $0x28] sm:$0xff] (!%p408_p2)   ;;  %v2918_v12 = vld [vmem:[%s3749_s3 + $0x30] sm:$0xff] (!%p408_p2)   ;;  %v2919_v13 = vld [vmem:[%s3749_s3 + $0x38] sm:$0xff] (!%p408_p2)   ;;  %vm1207_vm5 = vcmask (!%p408_p2), 7168  }
   0x8   : > { %2683 = vmatprep.subr.bf16.mxu0 (!%p408_p2), %v3020_v1  ;;  %2723 = vmatprep.mubr.msk.bf16.mxu1 (!%p408_p2), %vm3021_vm0, %v3020_v1  ;;  %v2922_v15 = vld [vmem:[%s3751_s5] sm:$0xff] (!%p408_p2)   ;;  %v2923_v16 = vld [vmem:[%s3751_s5 + $0x8] sm:$0xff] (!%p408_p2)   ;;  %v2924_v17 = vld [vmem:[%s3751_s5 + $0x10] sm:$0xff] (!%p408_p2)  }
   0x9   : > { %2910 = vset.pattern.permute.xlu0 (!%p408_p2), %v3022_v3  ;;  %2911 = vset.pattern.permute.xlu1 (!%p408_p2), %v3022_v3  ;;  %v2925_v18 = vld [vmem:[%s3751_s5 + $0x18] sm:$0xff] (!%p408_p2)   ;;  %v2926_v19 = vld [vmem:[%s3751_s5 + $0x20] sm:$0xff] (!%p408_p2)   ;;  %v2927_v30 = vld [vmem:[%s3751_s5 + $0x28] sm:$0xff] (!%p408_p2)  }
   0xa   : > { %2708 = vmatpush3.bf16.msra.mxu1 (!%p408_p2), %v2922_v15  ;;  %v2928_v31 = vld [vmem:[%s3751_s5 + $0x30] sm:$0xff] (!%p408_p2)   ;;  %v2929_v32 = vld [vmem:[%s3751_s5 + $0x38] sm:$0xff] (!%p408_p2)   ;;  %v2930_v33 = vld [vmem:[%s3754_s8] sm:$0xff] (!%p408_p2)  }
   0xb   : > { %2684 = vmatpush3.bf16.msra.mxu0 (!%p408_p2), %v2913_v2  ;;  %2709 = vmatprep.subr.bf16.mxu1 (!%p408_p2), %v3020_v1  ;;  %v2931_v34 = vld [vmem:[%s3754_s8 + $0x8] sm:$0xff] (!%p408_p2)   ;;  %v2932_v35 = vld [vmem:[%s3754_s8 + $0x10] sm:$0xff] (!%p408_p2)   ;;  %v2933_v36 = vld [vmem:[%s3754_s8 + $0x18] sm:$0xff] (!%p408_p2)  }
   0xc   : > { %2685 = vmatprep.subr.bf16.mxu0 (!%p408_p2), %v3020_v1  ;;  %v2934_v37 = vld [vmem:[%s3754_s8 + $0x20] sm:$0xff] (!%p408_p2)   ;;  %v2935_v54 = vld [vmem:[%s3754_s8 + $0x28] sm:$0xff] (!%p408_p2)   ;;  %v2936_v55 = vld [vmem:[%s3754_s8 + $0x30] sm:$0xff] (!%p408_p2)  }
   0xd   : > { %s3761_s26 = smov (!%p461_p3, %s2415_s26), 1  ;;  %v2442_v49 = vld [vmem:[%s3750_s4] ss:$0 sm:$0xff]  ;;  %v2937_v56 = vld [vmem:[%s3754_s8 + $0x38] sm:$0xff]  }
   0xe   : > { %s2593_s16 = sshll.u32 %s3761_s26, 3  ;;  %s2595_s27 = sshll.u32 %s3761_s26, 4  ;;  %2710 = vmatpush3.bf16.msra.mxu1 %v2923_v16  ;;  %v2443_v57 = vld [vmem:[%s3752_s6] ss:$0 sm:$0xff] }
   0xf   : > { %s3128_s19 = scalar_lea.vmem %s3746_s0, %s2593_s16  ;;  %s470_s22 = scalar_lea.vmem %s3747_s1, %s2593_s16  ;;  %2686 = vmatpush3.bf16.msra.mxu0 %v2914_v4  ;;  %2711 = vmatprep.subr.bf16.mxu1 %v3020_v1  ;;  %v3269_v2 = vld [vmem:[%s3753_s7] ss:$0 sm:$0xff] }
  0x10   : > { %s475_s30 = scalar_lea.vmem %s3748_s2, %s2595_s27  ;;  %2687 = vmatprep.subr.bf16.mxu0 %v3020_v1  ;;  %v2920_v14 = vld [vmem:[%s470_s22] sm:$0xff]  }
  0x11   : > { %v3143_v6 = vld [vmem:[%s475_s30] sm:$0xff]  ;;  %v3149_v8 = vld [vmem:[%s475_s30 + $0x8] sm:$0xff] }
  0x12   : > { %615 = vperm.xlu0 %2910, %v3143_v6   ;;  %v678_v9 = vmul.f32 %v3143_v6, %v3143_v6  ;;  %v679_v10 = vmul.f32 %v3149_v8, %v3149_v8  ;;  %2712 = vmatpush3.bf16.msra.mxu1 %v2924_v17  ;;  %v3199_v29 = vld [vmem:[%s3128_s19] sm:$0xff]   ;;  %vm486_vm3 = vcmp.gt.f32.partialorder %v3143_v6, 0.0  ;;  %vm487_vm4 = vcmp.gt.f32.partialorder %v3149_v8, 0.0 }
  0x13   : > { %2688 = vmatpush3.bf16.msra.mxu0 %v2915_v5  ;;  %2713 = vmatprep.subr.bf16.mxu1 %v3020_v1  ;;  %v2938_v17 = vld [vmem:[%s3756_s10] sm:$0xff]  }
  0x14   : > { %682 = vperm.xlu1 %2911, %v678_v9   ;;  %2689 = vmatprep.subr.bf16.mxu0 %v3020_v1 }
  0x16   : > { %620 = vperm.xlu0 %2910, %v3149_v8   ;;  %2714 = vmatpush3.bf16.msra.mxu1 %v2925_v18  ;;  %v2939_v18 = vld [vmem:[%s3756_s10 + $0x8] sm:$0xff]  }
  0x17   : > { %2690 = vmatpush3.bf16.msra.mxu0 %v2916_v7  ;;  %2715 = vmatprep.subr.bf16.mxu1 %v3020_v1 }
  0x18   : > { %687 = vperm.xlu1 %2911, %v679_v10   ;;  %2691 = vmatprep.subr.bf16.mxu0 %v3020_v1 }
  0x1a   : > { %2716 = vmatpush3.bf16.msra.mxu1 %v2926_v19  ;;  %v2940_v19 = vld [vmem:[%s3756_s10 + $0x10] sm:$0xff]  }
  0x1b   : > { %2692 = vmatpush3.bf16.msra.mxu0 %v2917_v11  ;;  %2717 = vmatprep.subr.bf16.mxu1 %v3020_v1 }
  0x1c   : > { %2693 = vmatprep.subr.bf16.mxu0 %v3020_v1 }
  0x1e   : > { %2718 = vmatpush3.bf16.msra.mxu1 %v2927_v30 }
  0x1f   : > { %2694 = vmatpush3.bf16.msra.mxu0 %v2918_v12  ;;  %2719 = vmatprep.subr.bf16.mxu1 %v3020_v1 }
  0x20   : > { %2695 = vmatprep.subr.bf16.mxu0 %v3020_v1 }
  0x22   : > { %2720 = vmatpush3.bf16.msra.mxu1 %v2928_v31 }
  0x23   : > { %2696 = vmatpush3.bf16.msra.mxu0 %v2919_v13  ;;  %2721 = vmatprep.subr.bf16.mxu1 %v3020_v1 }
  0x24   : > { %2701 = vmatprep.subr.bf16.mxu0 %v3020_v1 }
  0x26   : > { %2698 = vmatmul.mubr.bf16.vlgmr.msra.gmra.mrb[0].mxu0 %v2920_v14  ;;  %2722 = vmatpush3.bf16.msra.mxu1 %v2929_v32 }
  0x27   : > { %2703 = vmatprep.mubr.msk.bf16.mxu0 %vm3021_vm0, %v3020_v1  ;;  %2747 = vmatprep.subr.bf16.mxu1 %v3020_v1 }
  0x91   : > { %v3192_v20 = vpop.permute.xlu0 %615 }
  0x93   : > { %v3238_v38 = vpop.permute.xlu1 %682 }
  0x95   : > { %v3194_v23 = vpop.permute.xlu0 %620 }
  0x97   : > { %v3240_v39 = vpop.permute.xlu1 %687 }
  0xf9   : > { %v606_v21 = vpop.f32.mrb[0].mxu0 }
  0xfa   : > { %v2699_v22 = vpop.f32.mrb[1].mxu0  ;;  %v623_v25 = vmul.f32 %v3192_v20, %v606_v21  ;;  %v690_v41 = vmul.f32 %v3238_v38, %v606_v21  ;;  %v2941_v21 = vld [vmem:[%s3756_s10 + $0x18] sm:$0xff]  }
  0xfb   : > { %v609_v24 = vpop.f32.mrb[2].mxu0  ;;  %v2942_v22 = vld [vmem:[%s3756_s10 + $0x20] sm:$0xff]  }
  0xfc   : > { %v624_v26 = vmul.f32 %v3194_v23, %v609_v24  ;;  %v2700_v27 = vpop.f32.mrb[3].mxu0  ;;  %v691_v45 = vmul.f32 %v3240_v39, %v609_v24  ;;  %v2943_v24 = vld [vmem:[%s3756_s10 + $0x28] sm:$0xff]  }
  0xfd   : > { %v1101_v27 = vld [vmem:[%s3758_s12] sm:$0x1] }
  0xfe   : > { %v625_v28 = vpack.c.bf16 %v624_v26, %v623_v25  ;;  %v2944_v25 = vld [vmem:[%s3756_s10 + $0x30] sm:$0xff]   ;;  %v2945_v26 = vld [vmem:[%s3756_s10 + $0x38] sm:$0xff]  }
 0x100   : > { %2702 = vmatpush3.bf16.msra.mxu0 %v625_v28  ;;  %v1102_v28 = vmul.f32 %v1101_v27, %v1101_v27 }
 0x101   : > { %2727 = vmatprep.subr.bf16.mxu0 %v3020_v1 }
 0x102   : > { %v1104_v30 = vsel %vm1103_vm2, %v1102_v28, 0.0 }
 0x103   : > { %2704 = vmatmul.mubr.msk.bf16.vlgmr.msra.gmra.mrb[4].mxu0 %vm631_vm1, %v3199_v29  ;;  %1105 = vadd.xlane.f32.xlu0 %v1104_v30 }
 0x104   : > { %2743 = vmatprep.mubr.msk.bf16.mxu0 %vm3021_vm0, %v3020_v1  ;;  %2728 = vmatpush3.bf16.msra.mxu0 %v2930_v33 }
 0x105   : > { %2729 = vmatprep.subr.bf16.mxu0 %v3020_v1 }
 0x108   : > { %2730 = vmatpush3.bf16.msra.mxu0 %v2931_v34 }
 0x109   : > { %2731 = vmatprep.subr.bf16.mxu0 %v3020_v1 }
 0x10c   : > { %2732 = vmatpush3.bf16.msra.mxu0 %v2932_v35 }
 0x10d   : > { %2733 = vmatprep.subr.bf16.mxu0 %v3020_v1 }
 0x110   : > { %2734 = vmatpush3.bf16.msra.mxu0 %v2933_v36 }
 0x111   : > { %2735 = vmatprep.subr.bf16.mxu0 %v3020_v1 }
 0x114   : > { %2736 = vmatpush3.bf16.msra.mxu0 %v2934_v37 }
 0x115   : > { %2737 = vmatprep.subr.bf16.mxu0 %v3020_v1 }
 0x118   : > { %2738 = vmatpush3.bf16.msra.mxu0 %v2935_v54  ;;  %v2462_v54 = vld [vmem:[%s3757_s11] ss:$0 sm:$0xff] }
 0x119   : > { %2739 = vmatprep.subr.bf16.mxu0 %v3020_v1 }
 0x11c   : > { %2740 = vmatpush3.bf16.msra.mxu0 %v2936_v55 }
 0x11d   : > { %2741 = vmatprep.subr.bf16.mxu0 %v3020_v1 }
 0x120   : > { %2742 = vmatpush3.bf16.msra.mxu0 %v2937_v56 }
 0x121   : > { %2773 = vmatprep.subr.bf16.mxu0 %v3020_v1 }
 0x1d6   : > { %v669_v40 = vpop.f32.mrb[4].mxu0 }
 0x1d7   : > { %v676_v42 = vmul.f32 %v669_v40, %v3192_v20  ;;  %v2705_v43 = vpop.f32.mrb[5].mxu0 }
 0x1d8   : > { %v672_v44 = vpop.f32.mrb[6].mxu0 }
 0x1d9   : > { %v692_v46 = vadd.f32 %v690_v41, %v676_v42  ;;  %v677_v47 = vmul.f32 %v672_v44, %v3194_v23  ;;  %v2706_v48 = vpop.f32.mrb[7].mxu0  ;;  %v2461_v42 = vld [vmem:[%s3755_s9] ss:$0 sm:$0xff] }
 0x1db   : > { %v693_v50 = vadd.f32 %v691_v45, %v677_v47  ;;  %v700_v51 = vadd.f32 %v2442_v49, %v692_v46 }
 0x1dd   : > { %v701_v52 = vadd.f32 %v2442_v49, %v693_v50 }
 0x1df   : > { %v719_v53 = vpack.c.bf16 %v701_v52, %v700_v51  ;;  %v1118_v52 = vlaneseq }
 0x1e1   : > { %2724 = vmatmul.mubr.bf16.vlgmr.msra.gmra.mrb[0].mxu1 %v719_v53  ;;  %v3327_v53 = vshrl.u32 %v1118_v52, 7 }
 0x1e2   : > { %2749 = vmatprep.mubr.msk.bf16.mxu1 %vm3021_vm0, %v3020_v1 }
 0x1e3   : > { %v3333_v55 = vsub.s32 0, %v3327_v53 }
 0x2b4   : > { %v808_v58 = vpop.f32.mrb[0].mxu1 }
 0x2b5   : > { %v809_v59 = vadd.f32 %v2443_v57, %v808_v58  ;;  %v2725_v60 = vpop.f32.mrb[1].mxu1 }
 0x2b6   : > { %v811_v61 = vpop.f32.mrb[2].mxu1 }
 0x2b7   : > { %v815_v62 = vmax.f32 %v809_v59, 0.0  ;;  %v812_v63 = vadd.f32 %v2443_v57, %v811_v61  ;;  %v2726_v0 = vpop.f32.mrb[3].mxu1 }
 0x2b9   : > { %v816_v4 = vmax.f32 %v812_v63, 0.0  ;;  %v817_v5 = vadd.f32 %v3269_v2, %v815_v62  ;;  %v1121_v63 = vrot.slane %v1101_v27, %v3333_v55 }
 0x2bb   : > { %v818_v7 = vadd.f32 %v3269_v2, %v816_v4 }
 0x2bd   : > { %v836_v9 = vpack.c.bf16 %v818_v7, %v817_v5 }
 0x2bf   : > { %2744 = vmatmul.mubr.bf16.vlgmr.msra.gmra.mrb[8].mxu0 %v836_v9 }
 0x2c0   : > { %2775 = vmatprep.mubr.msk.bf16.mxu0 %vm3021_vm0, %v3020_v1 }
 0x392   : > { %v919_v10 = vpop.f32.mrb[8].mxu0 }
 0x393   : > { %v2745_v11 = vpop.f32.mrb[9].mxu0  ;;  %v926_v13 = vmul.f32 %v919_v10, %v3192_v20  ;;  %v972_v32 = vmul.f32 %v919_v10, %v3238_v38  ;;  %v3347_v10 = vsel %vm486_vm3, 1.0, %v3020_v1 }
 0x394   : > { %v922_v12 = vpop.f32.mrb[10].mxu0  ;;  %v2429_v11 = vsel %vm487_vm4, 1.0, %v3020_v1  ;;  %vm1134_vm6 = vcmp.gt.f32.partialorder %v3347_v10, 0.0 }
 0x395   : > { %v927_v14 = vmul.f32 %v922_v12, %v3194_v23  ;;  %v2746_v15 = vpop.f32.mrb[11].mxu0  ;;  %v973_v36 = vmul.f32 %v922_v12, %v3240_v39  ;;  %v1208_v12 = vsel %vm1207_vm5, %v3347_v10, 0.0  ;;  %vm1135_vm7 = vcmp.gt.f32.partialorder %v2429_v11, 0.0 }
 0x397   : > { %v928_v16 = vpack.c.bf16 %v927_v14, %v926_v13  ;;  %v1209_v13 = vsel %vm1207_vm5, %v2429_v11, 0.0 }
 0x398   : > { %v1210_v14 = vadd.f32 %v1209_v13, %v1208_v12 }
 0x399   : > { %2748 = vmatpush3.bf16.msra.mxu1 %v928_v16 }
 0x39a   : > { %2753 = vmatprep.subr.bf16.mxu1 %v3020_v1 }
 0x39c   : > { %2750 = vmatmul.mubr.msk.bf16.vlgmr.msra.gmra.mrb[4].mxu1 %vm631_vm1, %v3199_v29 }
 0x39d   : > { %2754 = vmatpush3.bf16.msra.mxu1 %v2938_v17  ;;  %2769 = vmatprep.mubr.msk.bf16.mxu1 %vm3021_vm0, %v3020_v1 }
 0x39e   : > { %2755 = vmatprep.subr.bf16.mxu1 %v3020_v1 }
 0x3a1   : > { %2756 = vmatpush3.bf16.msra.mxu1 %v2939_v18 }
 0x3a2   : > { %2757 = vmatprep.subr.bf16.mxu1 %v3020_v1 }
 0x3a5   : > { %2758 = vmatpush3.bf16.msra.mxu1 %v2940_v19 }
 0x3a6   : > { %2759 = vmatprep.subr.bf16.mxu1 %v3020_v1 }
 0x3a9   : > { %2760 = vmatpush3.bf16.msra.mxu1 %v2941_v21 }
 0x3aa   : > { %2761 = vmatprep.subr.bf16.mxu1 %v3020_v1 }
 0x3ad   : > { %2762 = vmatpush3.bf16.msra.mxu1 %v2942_v22 }
 0x3ae   : > { %2763 = vmatprep.subr.bf16.mxu1 %v3020_v1 }
 0x3b1   : > { %2764 = vmatpush3.bf16.msra.mxu1 %v2943_v24 }
 0x3b2   : > { %2765 = vmatprep.subr.bf16.mxu1 %v3020_v1 }
 0x3b5   : > { %2766 = vmatpush3.bf16.msra.mxu1 %v2944_v25  ;;  %v3363_v25 = vand.u32 127, %v1118_v52  ;;  %v2950_v52 = vld [vmem:[%s3754_s8 + $0x60] sm:$0xff]  }
 0x3b6   : > { %2767 = vmatprep.subr.bf16.mxu1 %v3020_v1 }
 0x3b7   : > { %vm1193_vm12 = vcmp.lt.s32.totalorder %v3363_v25, %v3327_v53 }
 0x3b9   : > { %2768 = vmatpush3.bf16.msra.mxu1 %v2945_v26  ;;  %v3366_v26 = vadd.s32 8, %v3327_v53 }
 0x3ba   : > { %2799 = vmatprep.subr.bf16.mxu1 %v3020_v1 }
 0x3bb   : > { %vm1194_vm8 = vcmp.lt.s32.totalorder %v3363_v25, %v3366_v26 }
 0x46f   : > { %v963_v31 = vpop.f32.mrb[4].mxu1 }
 0x470   : > { %v970_v33 = vmul.f32 %v963_v31, %v3192_v20  ;;  %v2751_v34 = vpop.f32.mrb[5].mxu1  ;;  %v1106_v20 = vpop.xlane.xlu0 %1105 }
 0x471   : > { %v966_v35 = vpop.f32.mrb[6].mxu1  ;;  %v1107_v38 = vrot.slane %v1106_v20, 4 }
 0x472   : > { %v974_v37 = vadd.f32 %v972_v32, %v970_v33  ;;  %v971_v40 = vmul.f32 %v966_v35, %v3194_v23  ;;  %v2752_v41 = vpop.f32.mrb[7].mxu1 }
 0x473   : > { %v1108_v47 = vadd.f32 %v1107_v38, %v1106_v20 }
 0x474   : > { %v975_v43 = vadd.f32 %v973_v36, %v971_v40  ;;  %v982_v44 = vadd.f32 %v2461_v42, %v974_v37 }
 0x475   : > { %v1109_v39 = vrot.slane %v1108_v47, 2 }
 0x476   : > { %v983_v45 = vadd.f32 %v2461_v42, %v975_v43 }
 0x477   : > { %v1110_v48 = vadd.f32 %v1109_v39, %v1108_v47  ;;  %v3023_v47 = vmov 1.0|1.0   ;;  %v2946_v39 = vld [vmem:[%s3754_s8 + $0x40] sm:$0xff]  }
 0x478   : > { %v1001_v46 = vpack.c.bf16 %v983_v45, %v982_v44 }
 0x479   : > { %v1111_v49 = vrot.slane %v1110_v48, 1 }
 0x47a   : > { %2770 = vmatmul.mubr.bf16.vlgmr.msra.gmra.mrb[8].mxu1 %v1001_v46 }
 0x47b   : > { %2801 = vmatprep.mubr.msk.bf16.mxu1 %vm3021_vm0, %v3020_v1  ;;  %v1112_v23 = vadd.f32 %v1111_v49, %v1110_v48  ;;  %v2947_v49 = vld [vmem:[%s3754_s8 + $0x48] sm:$0xff]  }
 0x47d   : > { %2877 = vpush %v1112_v23 }
 0x4ae   : > { %s2878_s15 = spop %2877 }
 0x4af   : > { %v1114_v50 = vstv %s2878_s15 }
 0x4b0   : > { %2978 = vrsqrt.f32 %v1114_v50  ;;  %v2948_v50 = vld [vmem:[%s3754_s8 + $0x50] sm:$0xff]  }
 0x4ba   : > { %v2979_v51 = vpop.eup %2978 }
 0x4bb   : > { %2879 = vpush %v2979_v51  ;;  %v2949_v51 = vld [vmem:[%s3754_s8 + $0x58] sm:$0xff]  }
 0x4ec   : > { %s2880_s18 = spop %2879 }
 0x4ed   : > { %v1129_v15 = vstv %s2880_s18 }
 0x54d   : > { %v1090_v56 = vpop.f32.mrb[8].mxu1 }
 0x54e   : > { %v1091_v57 = vadd.f32 %v2462_v54, %v1090_v56  ;;  %v2771_v58 = vpop.f32.mrb[9].mxu1  ;;  %v2952_v56 = vld [vmem:[%s3754_s8 + $0x70] sm:$0xff]  }
 0x54f   : > { %v1093_v59 = vpop.f32.mrb[10].mxu1 }
 0x550   : > { %v1097_v60 = vmax.f32 %v1091_v57, 0.0  ;;  %v1094_v61 = vadd.f32 %v2462_v54, %v1093_v59  ;;  %v2772_v62 = vpop.f32.mrb[11].mxu1  ;;  %v2951_v54 = vld [vmem:[%s3754_s8 + $0x68] sm:$0xff]   ;;  %v2953_v57 = vld [vmem:[%s3754_s8 + $0x78] sm:$0xff]  }
 0x552   : > { %v3337_v0 = vadd.f32 %v3269_v2, %v1097_v60  ;;  %v1098_v4 = vmax.f32 %v1094_v61, 0.0 }
 0x554   : > { %v3340_v5 = vadd.f32 %v3269_v2, %v1098_v4  ;;  %v1123_v7 = vmul.f32 %v1121_v63, %v3337_v0 }
 0x556   : > { %1125 = vadd.xlane.f32.xlu1 %v1123_v7  ;;  %v1124_v9 = vmul.f32 %v1121_v63, %v3340_v5 }
 0x558   : > { %1127 = vadd.xlane.f32.xlu0 %v1124_v9 }
 0x5e3   : > { %v1126_v16 = vpop.xlane.xlu1 %1125 }
 0x5e4   : > { %v1130_v17 = vmul.f32 %v1129_v15, %v1126_v16 }
 0x5e5   : > { %v1128_v18 = vpop.xlane.xlu0 %1127 }
 0x5e6   : > { %2980 = vtanh.f32 %v1130_v17  ;;  %v1131_v6 = vmul.f32 %v1129_v15, %v1128_v18 }
 0x5e8   : > { %2982 = vtanh.f32 %v1131_v6 }
 0x5f0   : > { %v3354_v8 = vpop.eup %2980 }
 0x5f1   : > { %v1136_v19 = vsel %vm1134_vm6, %v3354_v8, -1e+30  ;;  %v1231_v60 = vmul.f32 %v3354_v8, %v3337_v0 }
 0x5f2   : > { %v3359_v21 = vpop.eup %2982  ;;  %1181 = vperm.xlu0 %2910, %v1136_v19  }
 0x5f3   : > { %v1137_v22 = vsel %vm1135_vm7, %v3359_v21, -1e+30  ;;  %v1232_v59 = vmul.f32 %v3359_v21, %v3340_v5 }
 0x5f4   : > { %1186 = vperm.xlu1 %2911, %v1137_v22  }
 0x5f5   : > { %v2500_v62 = vpack.c.bf16 %v1232_v59, %v1231_v60 }
 0x610   : > { %1138 = vxpose.xlu0.b32.start [1/2] (short) (narrow) %v1136_v19, 8 }
 0x614   : > { %1139 = vxpose.xlu0.b32.end [2/2] (short) (narrow) %v1137_v22, 8 }
 0x618   : > { %1211 = vadd.xlane.f32.xlu1 %v1210_v14 }
 0x671   : > { %v1182_v24 = vpop.permute.xlu0 %1181 }
 0x673   : > { %v1187_v30 = vpop.permute.xlu1 %1186 }
 0x690   : > { %v1154_v27 = vpop.trf.xlu0 }
 0x691   : > { %v1178_v28 = vrot.slane %v1154_v27, %v3333_v55 }
 0x693   : > { %vm1190_vm9 = vcmp.gt.f32.partialorder %v1178_v28, %v1187_v30  ;;  %vm1192_vm10 = vcmp.eq.f32.partialorder %v1178_v28, %v1187_v30  ;;  %vm1191_vm11 = vcmp.eq.f32.partialorder %v1178_v28, %v1182_v24  ;;  %vm1189_vm14 = vcmp.gt.f32.partialorder %v1178_v28, %v1182_v24 }
 0x694   : > { %vm1196_vm13 = vmand %vm1192_vm10, %vm1194_vm8 }
 0x695   : > { %vm1198_vm15 = vmor %vm1190_vm9, %vm1196_vm13 }
 0x696   : > { %v1200_v31 = vsel %vm1198_vm15, 1.0, %v3020_v1  ;;  %vm1195_vm3 = vmand %vm1191_vm11, %vm1193_vm12 }
 0x697   : > { %v1204_v32 = vsel %vm631_vm1, %v1200_v31, 0.0  ;;  %vm1197_vm4 = vmor %vm1189_vm14, %vm1195_vm3 }
 0x698   : > { %1205 = vadd.xlane.f32.xlu0 %v1204_v32  ;;  %v1199_v33 = vsel %vm1197_vm4, 1.0, %v3020_v1 }
 0x699   : > { %v1201_v34 = vsel %vm631_vm1, %v1199_v33, 0.0 }
 0x69a   : > { %1202 = vadd.xlane.f32.xlu1 %v1201_v34 }
 0x6a5   : > { %v1212_v35 = vpop.xlane.xlu1 %1211 }
 0x6a6   : > { %v1213_v36 = vrot.slane %v1212_v35, 4 }
 0x6a8   : > { %v1214_v37 = vadd.f32 %v1213_v36, %v1212_v35 }
 0x6aa   : > { %v1215_v40 = vrot.slane %v1214_v37, 2 }
 0x6ac   : > { %v1216_v41 = vadd.f32 %v1215_v40, %v1214_v37 }
 0x6ae   : > { %v1217_v42 = vrot.slane %v1216_v41, 1 }
 0x6b0   : > { %v1218_v43 = vadd.f32 %v1217_v42, %v1216_v41 }
 0x6b2   : > { %2881 = vpush %v1218_v43 }
 0x6e3   : > { %s2882_s20 = spop %2881 }
 0x6e4   : > { %s1220_s21 = smul.f32 0.5, %s2882_s20 }
 0x6e6   : > { %s1221_s23 = sceil.f32 %s1220_s21 }
 0x6e7   : > { %v1222_v44 = vstv %s1221_s23 }
 0x725   : > { %v1206_v45 = vpop.xlane.xlu0 %1205 }
 0x726   : > { %vm1224_vm9 = vcmp.lt.f32.partialorder %v1206_v45, %v1222_v44  ;;  %v2954_v45 = vld [vmem:[%s3756_s10 + $0x40] sm:$0xff]  }
 0x727   : > { %vm1226_vm10 = vmand %vm1135_vm7, %vm1224_vm9  ;;  %v1203_v46 = vpop.xlane.xlu1 %1202 }
 0x728   : > { %vm1223_vm11 = vcmp.lt.f32.partialorder %v1203_v46, %v1222_v44  ;;  %v3387_v20 = vsel %vm1226_vm10, 1.0, %v3020_v1 }
 0x729   : > { %vm1225_vm13 = vmand %vm1134_vm6, %vm1223_vm11  ;;  %vm1230_vm6 = vcmp.gt.f32.partialorder %v3387_v20, 0.0  ;;  %v1246_v30 = vsel %vm1207_vm5, %v3387_v20, 0.0 }
 0x72a   : > { %v3390_v38 = vsel %vm1225_vm13, 1.0, %v3020_v1  ;;  %vm2471_vm14 = vmpackc.low %vm1226_vm10, %vm1225_vm13  ;;  %v1234_v23 = vsel %vm1230_vm6, 1, %v3022_v3 }
 0x72b   : > { %2774 = vmatpush3.bf16.msk.msra.mxu0 %vm2471_vm14, %v3023_v47  ;;  %vm1229_vm15 = vcmp.gt.f32.partialorder %v3390_v38, 0.0  ;;  %v1245_v28 = vsel %vm1207_vm5, %v3390_v38, 0.0 }
 0x72c   : > { %v1233_v48 = vsel %vm1229_vm15, 1, %v3022_v3  ;;  %2779 = vmatprep.subr.bf16.mxu0 %v3020_v1  ;;  %v1247_v31 = vadd.f32 %v1246_v30, %v1245_v28 }
 0x72d   : > { %1236 = vperm.xlu1 %2911, %v1233_v48   ;;  %v2955_v48 = vld [vmem:[%s3756_s10 + $0x48] sm:$0xff]  }
 0x72e   : > { %2776 = vmatmul.mubr.msk.bf16.vlgmr.msra.gmra.mrb[12].mxu0 %vm631_vm1, %v3199_v29 }
 0x72f   : > { %2780 = vmatpush3.bf16.msra.mxu0 %v2946_v39  ;;  %2795 = vmatprep.mubr.msk.bf16.mxu0 %vm3021_vm0, %v3020_v1 }
 0x730   : > { %2781 = vmatprep.subr.bf16.mxu0 %v3020_v1 }
 0x731   : > { %1239 = vperm.xlu1 %2911, %v1234_v23   ;;  %v2957_v23 = vld [vmem:[%s3756_s10 + $0x58] sm:$0xff]  }
 0x733   : > { %2782 = vmatpush3.bf16.msra.mxu0 %v2947_v49  ;;  %v2956_v49 = vld [vmem:[%s3756_s10 + $0x50] sm:$0xff]  }
 0x734   : > { %2783 = vmatprep.subr.bf16.mxu0 %v3020_v1 }
 0x737   : > { %2784 = vmatpush3.bf16.msra.mxu0 %v2948_v50  ;;  %v2958_v50 = vld [vmem:[%s3756_s10 + $0x60] sm:$0xff]  }
 0x738   : > { %2785 = vmatprep.subr.bf16.mxu0 %v3020_v1 }
 0x73b   : > { %2786 = vmatpush3.bf16.msra.mxu0 %v2949_v51 }
 0x73c   : > { %2787 = vmatprep.subr.bf16.mxu0 %v3020_v1 }
 0x73f   : > { %2788 = vmatpush3.bf16.msra.mxu0 %v2950_v52 }
 0x740   : > { %2789 = vmatprep.subr.bf16.mxu0 %v3020_v1 }
 0x743   : > { %2790 = vmatpush3.bf16.msra.mxu0 %v2951_v54 }
 0x744   : > { %2791 = vmatprep.subr.bf16.mxu0 %v3020_v1 }
 0x747   : > { %2792 = vmatpush3.bf16.msra.mxu0 %v2952_v56 }
 0x748   : > { %2793 = vmatprep.subr.bf16.mxu0 %v3020_v1 }
 0x74b   : > { %2794 = vmatpush3.bf16.msra.mxu0 %v2953_v57 }
 0x74c   : > { %2825 = vmatprep.subr.bf16.mxu0 %v3020_v1 }
 0x7ac   : > { %v1237_v58 = vpop.permute.xlu1 %1236 }
 0x7ad   : > { %vm1241_vm7 = vcmp.eq.s32.totalorder %v1237_v58, 1 }
 0x7ae   : > { %v1243_v63 = vsel %vm1241_vm7, %v1231_v60, 0.0  ;;  %v1268_v4 = vsel %vm1241_vm7, %v1231_v60, -1e+30  ;;  %v2959_v60 = vld [vmem:[%s3756_s10 + $0x68] sm:$0xff]  }
 0x7b0   : > { %v1240_v61 = vpop.permute.xlu1 %1239 }
 0x7b1   : > { %vm1242_vm3 = vcmp.eq.s32.totalorder %v1240_v61, 1  ;;  %v2960_v61 = vld [vmem:[%s3756_s10 + $0x70] sm:$0xff]  }
 0x7b2   : > { %v1244_v7 = vsel %vm1242_vm3, %v1232_v59, 0.0  ;;  %v1269_v9 = vsel %vm1242_vm3, %v1232_v59, -1e+30  ;;  %vm2499_vm4 = vmpackc.low %vm1242_vm3, %vm1241_vm7 }
 0x7b3   : > { %v3442_v10 = vadd.f32 %v1244_v7, %v1243_v63  ;;  %v3444_v11 = vmax.f32 %v1268_v4, %v1269_v9  ;;  %2796 = vmatmul.mubr.msk.bf16.vlgmr.msra.gmra.mrb[16].mxu0 %vm2499_vm4, %v2500_v62  ;;  %v2961_v62 = vld [vmem:[%s3756_s10 + $0x78] sm:$0xff]   ;;  %v2530_v63 = vld [vmem:[%s3758_s12 + $0x1] sm:$0x1] }
 0x7b4   : > { %2827 = vmatprep.mubr.msk.bf16.mxu0 %vm3021_vm0, %v3020_v1  ;;  %v1646_v4 = vmul.f32 %v2530_v63, %v2530_v63 }
 0x7b6   : > { %v1647_v7 = vsel %vm1103_vm2, %v1646_v4, 0.0 }
 0x7b7   : > { %1648 = vadd.xlane.f32.xlu0 %v1647_v7 }
 0x801   : > { %v1319_v5 = vpop.f32.mrb[12].mxu0 }
 0x802   : > { %v1320_v12 = vadd.f32 1.0, %v1319_v5  ;;  %v2777_v0 = vpop.f32.mrb[13].mxu0 }
 0x803   : > { %v1322_v13 = vpop.f32.mrb[14].mxu0 }
 0x804   : > { %v1326_v14 = vmul.f32 %v1320_v12, %v3390_v38  ;;  %v1323_v15 = vadd.f32 1.0, %v1322_v13  ;;  %v2778_v16 = vpop.f32.mrb[15].mxu0 }
 0x805   : > { %v2503_v16 = vld [vmem:[%s3755_s9 + $0x1] ss:$0 sm:$0xff] }
 0x806   : > { %2984 = vrsqrt.f32 %v1326_v14  ;;  %v1327_v17 = vmul.f32 %v1323_v15, %v3387_v20  ;;  %vm1328_vm9 = vcmp.gt.f32.partialorder %v1326_v14, 0.0 }
 0x808   : > { %2986 = vrsqrt.f32 %v1327_v17  ;;  %vm1329_vm10 = vcmp.gt.f32.partialorder %v1327_v17, 0.0 }
 0x810   : > { %v2985_v18 = vpop.eup %2984 }
 0x811   : > { %v1332_v6 = vsel %vm1328_vm9, %v2985_v18, 0.0 }
 0x812   : > { %v2987_v8 = vpop.eup %2986  ;;  %v1334_v19 = vmul.f32 %v1332_v6, %v3390_v38 }
 0x813   : > { %v1333_v21 = vsel %vm1329_vm10, %v2987_v8, 0.0 }
 0x814   : > { %1447 = vperm.xlu1 %2911, %v1334_v19   ;;  %v1335_v22 = vmul.f32 %v1333_v21, %v3387_v20  ;;  %v1501_v24 = vmul.f32 %v1334_v19, %v1334_v19  ;;  %v2962_v20 = vld [vmem:[%s3754_s8 + $0x80] sm:$0xff]  }
 0x816   : > { %v1502_v27 = vmul.f32 %v1335_v22, %v1335_v22 }
 0x818   : > { %1452 = vperm.xlu1 %2911, %v1335_v22  }
 0x81c   : > { %1505 = vperm.xlu1 %2911, %v1501_v24  }
 0x820   : > { %1510 = vperm.xlu1 %2911, %v1502_v27  }
 0x844   : > { %1248 = vadd.xlane.f32.xlu1 %v1247_v31  ;;  %v1649_v19 = vpop.xlane.xlu0 %1648 }
 0x845   : > { %v1650_v21 = vrot.slane %v1649_v19, 4 }
 0x847   : > { %v1651_v22 = vadd.f32 %v1650_v21, %v1649_v19 }
 0x849   : > { %v1652_v24 = vrot.slane %v1651_v22, 2 }
 0x84b   : > { %v1653_v27 = vadd.f32 %v1652_v24, %v1651_v22 }
 0x84d   : > { %v1654_v28 = vrot.slane %v1653_v27, 1 }
 0x84f   : > { %v1655_v30 = vadd.f32 %v1654_v28, %v1653_v27 }
 0x886   : > { %v1438_v32 = vpop.f32.mrb[16].mxu0 }
 0x887   : > { %v2797_v33 = vpop.f32.mrb[17].mxu0 }
 0x888   : > { %v1441_v34 = vpop.f32.mrb[18].mxu0  ;;  %v2521_v33 = vld [vmem:[%s3757_s11 + $0x1] ss:$0 sm:$0xff] }
 0x889   : > { %v2798_v35 = vpop.f32.mrb[19].mxu0 }
 0x893   : > { %v1448_v36 = vpop.permute.xlu1 %1447 }
 0x894   : > { %v1455_v40 = vmul.f32 %v1448_v36, %v1438_v32 }
 0x897   : > { %v1453_v37 = vpop.permute.xlu1 %1452 }
 0x898   : > { %v1456_v41 = vmul.f32 %v1453_v37, %v1441_v34 }
 0x89a   : > { %v1457_v42 = vpack.c.bf16 %v1456_v41, %v1455_v40 }
 0x89b   : > { %v1506_v43 = vpop.permute.xlu1 %1505 }
 0x89c   : > { %v1513_v44 = vmul.f32 %v1506_v43, %v1438_v32  ;;  %2800 = vmatpush3.bf16.msra.mxu1 %v1457_v42  ;;  %v1664_v43 = vrot.slane %v2530_v63, %v3333_v55 }
 0x89d   : > { %2805 = vmatprep.subr.bf16.mxu1 %v3020_v1 }
 0x89f   : > { %v1511_v46 = vpop.permute.xlu1 %1510  ;;  %2802 = vmatmul.mubr.msk.bf16.vlgmr.msra.gmra.mrb[12].mxu1 %vm631_vm1, %v3199_v29 }
 0x8a0   : > { %v1514_v39 = vmul.f32 %v1511_v46, %v1441_v34  ;;  %2806 = vmatpush3.bf16.msra.mxu1 %v2954_v45  ;;  %2821 = vmatprep.mubr.msk.bf16.mxu1 %vm3021_vm0, %v3020_v1 }
 0x8a1   : > { %2807 = vmatprep.subr.bf16.mxu1 %v3020_v1 }
 0x8a4   : > { %2808 = vmatpush3.bf16.msra.mxu1 %v2955_v48 }
 0x8a5   : > { %2809 = vmatprep.subr.bf16.mxu1 %v3020_v1 }
 0x8a8   : > { %2810 = vmatpush3.bf16.msra.mxu1 %v2956_v49 }
 0x8a9   : > { %2811 = vmatprep.subr.bf16.mxu1 %v3020_v1 }
 0x8ac   : > { %2812 = vmatpush3.bf16.msra.mxu1 %v2957_v23 }
 0x8ad   : > { %2813 = vmatprep.subr.bf16.mxu1 %v3020_v1 }
 0x8b0   : > { %2814 = vmatpush3.bf16.msra.mxu1 %v2958_v50 }
 0x8b1   : > { %2815 = vmatprep.subr.bf16.mxu1 %v3020_v1 }
 0x8b4   : > { %2816 = vmatpush3.bf16.msra.mxu1 %v2959_v60 }
 0x8b5   : > { %2817 = vmatprep.subr.bf16.mxu1 %v3020_v1 }
 0x8b8   : > { %2818 = vmatpush3.bf16.msra.mxu1 %v2960_v61 }
 0x8b9   : > { %2819 = vmatprep.subr.bf16.mxu1 %v3020_v1 }
 0x8bc   : > { %2820 = vmatpush3.bf16.msra.mxu1 %v2961_v62 }
 0x8bd   : > { %2851 = vmatprep.subr.bf16.mxu1 %v3020_v1 }
 0x8d1   : > { %v1249_v51 = vpop.xlane.xlu1 %1248 }
 0x8d2   : > { %v1250_v52 = vrot.slane %v1249_v51, 4 }
 0x8d4   : > { %v1251_v54 = vadd.f32 %v1250_v52, %v1249_v51 }
 0x8d6   : > { %v1252_v56 = vrot.slane %v1251_v54, 2 }
 0x8d8   : > { %v1253_v57 = vadd.f32 %v1252_v56, %v1251_v54 }
 0x8da   : > { %v1254_v58 = vrot.slane %v1253_v57, 1 }
 0x8dc   : > { %v1255_v59 = vadd.f32 %v1254_v58, %v1253_v57 }
 0x8de   : > { %2883 = vpush %v1255_v59 }
 0x8df   : > { %2885 = vpush %v1655_v30 }
 0x90f   : > { %s3502_s20 = spop %2883 }
 0x910   : > { %s2886_s21 = spop %2885  ;;  %s1741_s29 = smul.f32 0.5, %s3502_s20 }
 0x911   : > { %v1657_v31 = vstv %s2886_s21  ;;  %p1277_p4 = scmp.gt.f32.partialorder %s3502_s20, 0.0 }
 0x912   : > { %2988 = vrsqrt.f32 %v1657_v31  ;;  %s1742_s30 = sceil.f32 %s1741_s29 }
 0x913   : > { %s1278_s29 = scalar_select %p1277_p4, 1, 0 }
 0x91c   : > { %v2989_v32 = vpop.eup %2988 }
 0x91d   : > { %2887 = vpush %v2989_v32 }
 0x94e   : > { %s2888_s28 = spop %2887 }
 0x94f   : > { %v1672_v49 = vstv %s2888_s28  ;;  %s3024_s28 = smov 1.0  }
 0x972   : > { %v1492_v9 = vpop.f32.mrb[12].mxu1 }
 0x973   : > { %v1499_v5 = vmul.f32 %v1492_v9, %v1448_v36  ;;  %v2803_v12 = vpop.f32.mrb[13].mxu1  ;;  %v1743_v9 = vstv %s1742_s30 }
 0x974   : > { %v1495_v0 = vpop.f32.mrb[14].mxu1 }
 0x975   : > { %v1515_v13 = vadd.f32 %v1513_v44, %v1499_v5  ;;  %v1500_v14 = vmul.f32 %v1495_v0, %v1453_v37  ;;  %v2804_v15 = vpop.f32.mrb[15].mxu1 }
 0x976   : > { %v2965_v15 = vld [vmem:[%s3754_s8 + $0x98] sm:$0xff]  }
 0x977   : > { %v1516_v17 = vadd.f32 %v1514_v39, %v1500_v14  ;;  %v1523_v18 = vadd.f32 %v2503_v16, %v1515_v13 }
 0x979   : > { %v1524_v6 = vadd.f32 %v2503_v16, %v1516_v17  ;;  %v2966_v16 = vld [vmem:[%s3754_s8 + $0xa0] sm:$0xff]   ;;  %v2967_v17 = vld [vmem:[%s3754_s8 + $0xa8] sm:$0xff]  }
 0x97b   : > { %v1544_v8 = vpack.c.bf16 %v1524_v6, %v1523_v18  ;;  %v2968_v18 = vld [vmem:[%s3754_s8 + $0xb0] sm:$0xff]   ;;  %v2969_v6 = vld [vmem:[%s3754_s8 + $0xb8] sm:$0xff]  }
 0x97d   : > { %2822 = vmatmul.mubr.bf16.vlgmr.msra.gmra.mrb[16].mxu1 %v1544_v8 }
 0x97e   : > { %2853 = vmatprep.mubr.msk.bf16.mxu1 %vm3021_vm0, %v3020_v1 }
 0xa50   : > { %v1633_v34 = vpop.f32.mrb[16].mxu1 }
 0xa51   : > { %v1634_v35 = vadd.f32 %v2521_v33, %v1633_v34  ;;  %v2823_v36 = vpop.f32.mrb[17].mxu1 }
 0xa52   : > { %v1636_v37 = vpop.f32.mrb[18].mxu1 }
 0xa53   : > { %v1640_v40 = vmax.f32 %v1634_v35, 0.0  ;;  %v1637_v41 = vadd.f32 %v2521_v33, %v1636_v37  ;;  %v2824_v42 = vpop.f32.mrb[19].mxu1 }
 0xa55   : > { %v3509_v44 = vadd.f32 %v3269_v2, %v1640_v40  ;;  %v1641_v45 = vmax.f32 %v1637_v41, 0.0 }
 0xa57   : > { %v3512_v46 = vadd.f32 %v3269_v2, %v1641_v45  ;;  %v1666_v39 = vmul.f32 %v1664_v43, %v3509_v44 }
 0xa59   : > { %1668 = vadd.xlane.f32.xlu0 %v1666_v39  ;;  %v1667_v48 = vmul.f32 %v1664_v43, %v3512_v46 }
 0xa5d   : > { %1670 = vadd.xlane.f32.xlu0 %v1667_v48 }
 0xae6   : > { %v1669_v23 = vpop.xlane.xlu0 %1668 }
 0xae7   : > { %v1673_v50 = vmul.f32 %v1672_v49, %v1669_v23 }
 0xae9   : > { %2990 = vtanh.f32 %v1673_v50 }
 0xaea   : > { %v1671_v51 = vpop.xlane.xlu0 %1670 }
 0xaeb   : > { %v1674_v52 = vmul.f32 %v1672_v49, %v1671_v51 }
 0xaed   : > { %2992 = vtanh.f32 %v1674_v52 }
 0xaf3   : > { %v3516_v54 = vpop.eup %2990 }
 0xaf4   : > { %v1677_v2 = vsel %vm1229_vm15, %v3516_v54, -1e+30  ;;  %v1752_v21 = vmul.f32 %v3516_v54, %v3509_v44 }
 0xaf5   : > { %1717 = vperm.xlu0 %2910, %v1677_v2  }
 0xaf7   : > { %v3521_v56 = vpop.eup %2992 }
 0xaf8   : > { %v1678_v57 = vsel %vm1230_vm6, %v3521_v56, -1e+30  ;;  %v1753_v19 = vmul.f32 %v3521_v56, %v3512_v46 }
 0xaf9   : > { %1722 = vperm.xlu1 %2911, %v1678_v57  }
 0xafa   : > { %v2560_v24 = vpack.c.bf16 %v1753_v19, %v1752_v21 }
 0xb13   : > { %1679 = vxpose.xlu0.b32.start [1/2] (short) (narrow) %v1677_v2, 8 }
 0xb17   : > { %1680 = vxpose.xlu0.b32.end [2/2] (short) (narrow) %v1678_v57, 8 }
 0xb74   : > { %v1718_v58 = vpop.permute.xlu0 %1717 }
 0xb78   : > { %v1723_v61 = vpop.permute.xlu1 %1722 }
 0xb93   : > { %v1695_v59 = vpop.trf.xlu0 }
 0xb94   : > { %v1714_v60 = vrot.slane %v1695_v59, %v3333_v55 }
 0xb96   : > { %vm1726_vm11 = vcmp.gt.f32.partialorder %v1714_v60, %v1723_v61  ;;  %vm1728_vm13 = vcmp.eq.f32.partialorder %v1714_v60, %v1723_v61  ;;  %vm1727_vm14 = vcmp.eq.f32.partialorder %v1714_v60, %v1718_v58  ;;  %vm1725_vm3 = vcmp.gt.f32.partialorder %v1714_v60, %v1718_v58 }
 0xb97   : > { %vm1730_vm7 = vmand %vm1728_vm13, %vm1194_vm8 }
 0xb98   : > { %vm1732_vm4 = vmor %vm1726_vm11, %vm1730_vm7 }
 0xb99   : > { %v1734_v62 = vsel %vm1732_vm4, 1.0, %v3020_v1  ;;  %vm1729_vm9 = vmand %vm1727_vm14, %vm1193_vm12 }
 0xb9a   : > { %v1738_v63 = vsel %vm631_vm1, %v1734_v62, 0.0  ;;  %vm1731_vm10 = vmor %vm1725_vm3, %vm1729_vm9 }
 0xb9b   : > { %1739 = vadd.xlane.f32.xlu0 %v1738_v63  ;;  %v1733_v4 = vsel %vm1731_vm10, 1.0, %v3020_v1 }
 0xb9c   : > { %v1735_v7 = vsel %vm631_vm1, %v1733_v4, 0.0 }
 0xb9d   : > { %1736 = vadd.xlane.f32.xlu1 %v1735_v7 }
 0xc28   : > { %v1740_v5 = vpop.xlane.xlu0 %1739 }
 0xc29   : > { %vm1745_vm11 = vcmp.lt.f32.partialorder %v1740_v5, %v1743_v9  ;;  %v3010_v5 = vld [vmem:[%s3128_s19] sm:$0xff]   ;;  %s1264_s19 = smax.f32 %s3024_s28, %s3502_s20 }
 0xc2a   : > { %vm1747_vm13 = vmand %vm1230_vm6, %vm1745_vm11  ;;  %v1737_v12 = vpop.xlane.xlu1 %1736 }
 0xc2b   : > { %vm1744_vm7 = vcmp.lt.f32.partialorder %v1737_v12, %v1743_v9  ;;  %v3543_v0 = vsel %vm1747_vm13, 1.0, %v3020_v1  ;;  %v2970_v9 = vld [vmem:[%s3756_s10 + $0x80] sm:$0xff]   ;;  %v2971_v12 = vld [vmem:[%s3756_s10 + $0x88] sm:$0xff]  }
 0xc2c   : > { %vm1746_vm14 = vmand %vm1229_vm15, %vm1744_vm7  ;;  %vm1751_vm15 = vcmp.gt.f32.partialorder %v3543_v0, 0.0  ;;  %v1767_v52 = vsel %vm1207_vm5, %v3543_v0, 0.0 }
 0xc2d   : > { %v3546_v13 = vsel %vm1746_vm14, 1.0, %v3020_v1  ;;  %vm2531_vm3 = vmpackc.low %vm1747_vm13, %vm1746_vm14  ;;  %v1755_v14 = vsel %vm1751_vm15, 1, %v3022_v3 }
 0xc2e   : > { %2826 = vmatpush3.bf16.msk.msra.mxu0 %vm2531_vm3, %v3023_v47  ;;  %vm1750_vm4 = vcmp.gt.f32.partialorder %v3546_v13, 0.0  ;;  %v2963_v47 = vld [vmem:[%s3754_s8 + $0x88] sm:$0xff]   ;;  %v1766_v51 = vsel %vm1207_vm5, %v3546_v13, 0.0 }
 0xc2f   : > { %v1754_v38 = vsel %vm1750_vm4, 1, %v3022_v3  ;;  %2831 = vmatprep.subr.bf16.mxu0 %v3020_v1  ;;  %v1768_v54 = vadd.f32 %v1767_v52, %v1766_v51 }
 0xc30   : > { %1757 = vperm.xlu1 %2911, %v1754_v38   ;;  %v2973_v38 = vld [vmem:[%s3756_s10 + $0x98] sm:$0xff]  }
 0xc31   : > { %2828 = vmatmul.mubr.msk.bf16.vlgmr.msra.gmra.mrb[20].mxu0 %vm631_vm1, %v3199_v29  ;;  %v2964_v29 = vld [vmem:[%s3754_s8 + $0x90] sm:$0xff]  }
 0xc32   : > { %2832 = vmatpush3.bf16.msra.mxu0 %v2962_v20  ;;  %2847 = vmatprep.mubr.msk.bf16.mxu0 %vm3021_vm0, %v3020_v1  ;;  %v2972_v20 = vld [vmem:[%s3756_s10 + $0x90] sm:$0xff]  }
 0xc33   : > { %2833 = vmatprep.subr.bf16.mxu0 %v3020_v1 }
 0xc34   : > { %1760 = vperm.xlu1 %2911, %v1755_v14  }
 0xc36   : > { %2834 = vmatpush3.bf16.msra.mxu0 %v2963_v47  ;;  %v2974_v47 = vld [vmem:[%s3756_s10 + $0xa0] sm:$0xff]  }
 0xc37   : > { %2835 = vmatprep.subr.bf16.mxu0 %v3020_v1 }
 0xc3a   : > { %2836 = vmatpush3.bf16.msra.mxu0 %v2964_v29 }
 0xc3b   : > { %2837 = vmatprep.subr.bf16.mxu0 %v3020_v1 }
 0xc3e   : > { %2838 = vmatpush3.bf16.msra.mxu0 %v2965_v15 }
 0xc3f   : > { %2839 = vmatprep.subr.bf16.mxu0 %v3020_v1 }
 0xc42   : > { %2840 = vmatpush3.bf16.msra.mxu0 %v2966_v16 }
 0xc43   : > { %2841 = vmatprep.subr.bf16.mxu0 %v3020_v1 }
 0xc46   : > { %2842 = vmatpush3.bf16.msra.mxu0 %v2967_v17 }
 0xc47   : > { %2843 = vmatprep.subr.bf16.mxu0 %v3020_v1 }
 0xc4a   : > { %2844 = vmatpush3.bf16.msra.mxu0 %v2968_v18 }
 0xc4b   : > { %2845 = vmatprep.subr.bf16.mxu0 %v3020_v1 }
 0xc4e   : > { %2846 = vmatpush3.bf16.msra.mxu0 %v2969_v6 }
 0xcaf   : > { %v1758_v8 = vpop.permute.xlu1 %1757 }
 0xcb0   : > { %vm1762_vm6 = vcmp.eq.s32.totalorder %v1758_v8, 1  ;;  %v2975_v8 = vld [vmem:[%s3756_s10 + $0xa8] sm:$0xff]  }
 0xcb1   : > { %v1764_v27 = vsel %vm1762_vm6, %v1752_v21, 0.0  ;;  %v1789_v28 = vsel %vm1762_vm6, %v1752_v21, -1e+30  ;;  %v2977_v21 = vld [vmem:[%s3756_s10 + $0xb8] sm:$0xff]  }
 0xcb3   : > { %v1761_v22 = vpop.permute.xlu1 %1760 }
 0xcb4   : > { %vm1763_vm9 = vcmp.eq.s32.totalorder %v1761_v22, 1  ;;  %v1271_v22 = vrot.slane %v3444_v11, 4 }
 0xcb5   : > { %v1765_v30 = vsel %vm1763_vm9, %v1753_v19, 0.0  ;;  %v1790_v31 = vsel %vm1763_vm9, %v1753_v19, -1e+30  ;;  %vm2559_vm10 = vmpackc.low %vm1763_vm9, %vm1762_vm6  ;;  %v2976_v19 = vld [vmem:[%s3756_s10 + $0xb0] sm:$0xff]  }
 0xcb6   : > { %v3597_v32 = vadd.f32 %v1765_v30, %v1764_v27  ;;  %v3599_v33 = vmax.f32 %v1789_v28, %v1790_v31  ;;  %2848 = vmatmul.mubr.msk.bf16.vlgmr.msra.gmra.mrb[24].mxu0 %vm2559_vm10, %v2560_v24  ;;  %v3661_v27 = vld [vmem:[%s3758_s12 + $0x2] sm:$0x1]  ;;  %v1272_v30 = vmax.f32 %v3444_v11, %v1271_v22 }
 0xcb7   : > { %v2167_v28 = vmul.f32 %v3661_v27, %v3661_v27 }
 0xcb8   : > { %v1792_v24 = vrot.slane %v3599_v33, 4 }
 0xcba   : > { %v1793_v31 = vmax.f32 %v3599_v33, %v1792_v24 }
 0xd04   : > { %v1840_v34 = vpop.f32.mrb[20].mxu0 }
 0xd05   : > { %v1841_v35 = vadd.f32 1.0, %v1840_v34  ;;  %v2829_v36 = vpop.f32.mrb[21].mxu0  ;;  %v2168_v34 = vsel %vm1103_vm2, %v2167_v28, 0.0 }
 0xd06   : > { %v1843_v37 = vpop.f32.mrb[22].mxu0  ;;  %v1273_v36 = vrot.slane %v1272_v30, 2 }
 0xd07   : > { %v1847_v40 = vmul.f32 %v1841_v35, %v3546_v13  ;;  %v1844_v41 = vadd.f32 1.0, %v1843_v37  ;;  %v2830_v42 = vpop.f32.mrb[23].mxu0  ;;  %v1258_v35 = vrot.slane %v3442_v10, 4  ;;  %v1779_v37 = vrot.slane %v3597_v32, 4 }
 0xd08   : > { %v1274_v42 = vmax.f32 %v1272_v30, %v1273_v36 }
 0xd09   : > { %2994 = vrsqrt.f32 %v1847_v40  ;;  %v1848_v43 = vmul.f32 %v1844_v41, %v3543_v0  ;;  %vm1849_vm11 = vcmp.gt.f32.partialorder %v1847_v40, 0.0  ;;  %v1794_v40 = vrot.slane %v1793_v31, 2 }
 0xd0a   : > { %v1259_v41 = vadd.f32 %v1258_v35, %v3442_v10  ;;  %v1780_v11 = vadd.f32 %v1779_v37, %v3597_v32  ;;  %v2581_v35 = vld [vmem:[%s3757_s11 + $0x2] ss:$0 sm:$0xff] }
 0xd0b   : > { %2996 = vrsqrt.f32 %v1848_v43  ;;  %vm1850_vm13 = vcmp.gt.f32.partialorder %v1848_v43, 0.0  ;;  %v1795_v33 = vmax.f32 %v1793_v31, %v1794_v40  ;;  %v1265_v43 = vstv %s1264_s19 }
 0xd0c   : > { %2998 = vrcp.f32 %v1265_v43  ;;  %v2185_v43 = vrot.slane %v3661_v27, %v3333_v55 }
 0xd13   : > { %v2995_v44 = vpop.eup %2994 }
 0xd14   : > { %v1853_v45 = vsel %vm1849_vm11, %v2995_v44, 0.0  ;;  %v1260_v44 = vrot.slane %v1259_v41, 2 }
 0xd15   : > { %v2997_v46 = vpop.eup %2996  ;;  %v1855_v39 = vmul.f32 %v1853_v45, %v3546_v13  ;;  %v1275_v45 = vrot.slane %v1274_v42, 1 }
 0xd16   : > { %v1854_v48 = vsel %vm1850_vm13, %v2997_v46, 0.0  ;;  %v1279_v46 = vstv %s1278_s29 }
 0xd17   : > { %1968 = vperm.xlu1 %2911, %v1855_v39   ;;  %v1856_v49 = vmul.f32 %v1854_v48, %v3543_v0  ;;  %v2022_v50 = vmul.f32 %v1855_v39, %v1855_v39  ;;  %v1781_v39 = vrot.slane %v1780_v11, 2  ;;  %v1796_v48 = vrot.slane %v1795_v33, 1 }
 0xd18   : > { %v1276_v32 = vmax.f32 %v1274_v42, %v1275_v45 }
 0xd19   : > { %v2023_v23 = vmul.f32 %v1856_v49, %v1856_v49 }
 0xd1b   : > { %1973 = vperm.xlu1 %2911, %v1856_v49   ;;  %2031 = vperm.xlu0 %2910, %v2023_v23   ;;  %v1261_v49 = vadd.f32 %v1260_v44, %v1259_v41  ;;  %v1782_v23 = vadd.f32 %v1781_v39, %v1780_v11  ;;  %v3011_v44 = vld [vmem:[%s3753_s7] ss:$0 sm:$0xff] }
 0xd1f   : > { %2026 = vperm.xlu1 %2911, %v2022_v50   ;;  %v1797_v50 = vmax.f32 %v1795_v33, %v1796_v48 }
 0xd3a   : > { %2169 = vadd.xlane.f32.xlu0 %v2168_v34 }
 0xd43   : > { %1769 = vadd.xlane.f32.xlu1 %v1768_v54 }
 0xd89   : > { %v1959_v2 = vpop.f32.mrb[24].mxu0 }
 0xd8a   : > { %v2849_v56 = vpop.f32.mrb[25].mxu0 }
 0xd8b   : > { %v3609_v57 = vpop.f32.mrb[26].mxu0  ;;  %v1262_v56 = vrot.slane %v1261_v49, 1 }
 0xd8c   : > { %v2850_v58 = vpop.f32.mrb[27].mxu0 }
 0xd8d   : > { %v1783_v58 = vrot.slane %v1782_v23, 1 }
 0xd96   : > { %v3611_v59 = vpop.permute.xlu1 %1968 }
 0xd97   : > { %v1976_v61 = vmul.f32 %v3611_v59, %v1959_v2 }
 0xd9a   : > { %v3613_v60 = vpop.permute.xlu1 %1973 }
 0xd9b   : > { %v1977_v62 = vmul.f32 %v3613_v60, %v3609_v57 }
 0xd9d   : > { %v1978_v63 = vpack.c.bf16 %v1977_v62, %v1976_v61  ;;  %v2999_v61 = vpop.eup %2998  ;;  %v1263_v62 = vadd.f32 %v1262_v56, %v1261_v49 }
 0xd9e   : > { %v2027_v4 = vpop.permute.xlu1 %2026 }
 0xd9f   : > { %v3618_v7 = vmul.f32 %v2027_v4, %v1959_v2  ;;  %2852 = vmatpush3.bf16.msra.mxu1 %v1978_v63  ;;  %v1784_v63 = vadd.f32 %v1783_v58, %v1782_v23 }
 0xda0   : > { %2857 = vmatprep.subr.bf16.mxu1 %v3020_v1 }
 0xda2   : > { %2854 = vmatmul.mubr.msk.bf16.vlgmr.msra.gmra.mrb[20].mxu1 %vm631_vm1, %v3010_v5 }
 0xda3   : > { %2858 = vmatpush3.bf16.msra.mxu1 %v2970_v9  ;;  %2873 = vmatprep.mubr.msk.bf16.mxu1 %vm3021_vm0, %v3020_v1  ;;  %vm1280_vm0 = vcmp.eq.s32.totalorder %v1279_v46, 1  ;;  %v1267_v9 = vmul.f32 %v2999_v61, %v1263_v62 }
 0xda4   : > { %2859 = vmatprep.subr.bf16.mxu1 %v3020_v1  ;;  %v1281_v52 = vsel %vm1280_vm0, %v1276_v32, 0.0 }
 0xda7   : > { %2860 = vmatpush3.bf16.msra.mxu1 %v2971_v12 }
 0xda8   : > { %2861 = vmatprep.subr.bf16.mxu1 %v3020_v1 }
 0xdab   : > { %2862 = vmatpush3.bf16.msra.mxu1 %v2972_v20  ;;  %v2032_v20 = vpop.permute.xlu0 %2031 }
 0xdac   : > { %2863 = vmatprep.subr.bf16.mxu1 %v3020_v1 }
 0xdaf   : > { %2864 = vmatpush3.bf16.msra.mxu1 %v2973_v38 }
 0xdb0   : > { %2865 = vmatprep.subr.bf16.mxu1 %v3020_v1 }
 0xdb3   : > { %2866 = vmatpush3.bf16.msra.mxu1 %v2974_v47 }
 0xdb4   : > { %2867 = vmatprep.subr.bf16.mxu1 %v3020_v1 }
 0xdb7   : > { %2868 = vmatpush3.bf16.msra.mxu1 %v2975_v8 }
 0xdb8   : > { %2869 = vmatprep.subr.bf16.mxu1 %v3020_v1 }
 0xdbb   : > { %2870 = vmatpush3.bf16.msra.mxu1 %v2976_v19 }
 0xdbc   : > { %2871 = vmatprep.subr.bf16.mxu1 %v3020_v1 }
 0xdbf   : > { %2872 = vmatpush3.bf16.msra.mxu1 %v2977_v21 }
 0xdc7   : > { %v2170_v24 = vpop.xlane.xlu0 %2169 }
 0xdd0   : > { %v1770_v14 = vpop.xlane.xlu1 %1769 }
 0xdd1   : > { %v1771_v29 = vrot.slane %v1770_v14, 4 }
 0xdd3   : > { %v1772_v15 = vadd.f32 %v1771_v29, %v1770_v14 }
 0xdd5   : > { %v1773_v16 = vrot.slane %v1772_v15, 2 }
 0xdd7   : > { %v1774_v17 = vadd.f32 %v1773_v16, %v1772_v15  ;;  %v2035_v15 = vmul.f32 %v2032_v20, %v3609_v57 }
 0xdd9   : > { %v1775_v18 = vrot.slane %v1774_v17, 1 }
 0xddb   : > { %v1776_v6 = vadd.f32 %v1775_v18, %v1774_v17 }
 0xddd   : > { %2889 = vpush %v1776_v6  ;;  %v2563_v6 = vld [vmem:[%s3755_s9 + $0x2] ss:$0 sm:$0xff] }
 0xe0e   : > { %s3675_s30 = spop %2889 }
 0xe0f   : > { %p1798_p5 = scmp.gt.f32.partialorder %s3675_s30, 0.0  ;;  %s1785_s22 = smax.f32 %s3024_s28, %s3675_s30 }
 0xe10   : > { %v1786_v10 = vstv %s1785_s22  ;;  %s2262_s19 = smul.f32 0.5, %s3675_s30 }
 0xe11   : > { %s1799_s20 = scalar_select %p1798_p5, 1, 0  ;;  %3000 = vrcp.f32 %v1786_v10 }
 0xe12   : > { %s2263_s29 = sceil.f32 %s2262_s19 }
 0xe13   : > { %v1800_v51 = vstv %s1799_s20  ;;  %v2264_v53 = vstv %s2263_s29 }
 0xe14   : > { %vm1801_vm2 = vcmp.eq.s32.totalorder %v1800_v51, 1 }
 0xe15   : > { %v1802_v54 = vsel %vm1801_vm2, %v1797_v50, 0.0 }
 0xe16   : > { %v3680_v2 = vadd.f32 %v1802_v54, %v1281_v52 }
 0xe1b   : > { %v3001_v4 = vpop.eup %3000 }
 0xe1c   : > { %v1788_v5 = vmul.f32 %v3001_v4, %v1784_v63 }
 0xe1e   : > { %v3682_v12 = vadd.f32 %v1788_v5, %v1267_v9 }
 0xe75   : > { %v2013_v38 = vpop.f32.mrb[20].mxu1 }
 0xe76   : > { %v2020_v47 = vmul.f32 %v2013_v38, %v3611_v59  ;;  %v2855_v14 = vpop.f32.mrb[21].mxu1  ;;  %v2171_v59 = vrot.slane %v2170_v24, 4 }
 0xe77   : > { %v2016_v29 = vpop.f32.mrb[22].mxu1 }
 0xe78   : > { %v2036_v16 = vadd.f32 %v3618_v7, %v2020_v47  ;;  %v2021_v17 = vmul.f32 %v2016_v29, %v3613_v60  ;;  %v2856_v18 = vpop.f32.mrb[23].mxu1  ;;  %v2172_v28 = vadd.f32 %v2171_v59, %v2170_v24 }
 0xe7a   : > { %v2037_v8 = vadd.f32 %v2035_v15, %v2021_v17  ;;  %v2044_v19 = vadd.f32 %v2563_v6, %v2036_v16  ;;  %v2173_v30 = vrot.slane %v2172_v28, 2 }
 0xe7c   : > { %v2045_v21 = vadd.f32 %v2563_v6, %v2037_v8  ;;  %v2174_v31 = vadd.f32 %v2173_v30, %v2172_v28 }
 0xe7e   : > { %v2065_v22 = vpack.c.bf16 %v2045_v21, %v2044_v19  ;;  %v2175_v57 = vrot.slane %v2174_v31, 1 }
 0xe80   : > { %2874 = vmatmul.mubr.bf16.vlgmr.msra.gmra.mrb[24].mxu1 %v2065_v22  ;;  %v2176_v34 = vadd.f32 %v2175_v57, %v2174_v31 }
 0xe82   : > { %2891 = vpush %v2176_v34 }
 0xeb3   : > { %s2892_s16 = spop %2891 }
 0xeb4   : > { %v2178_v60 = vstv %s2892_s16  ;;  %s480_s16 = scalar_lea.vmem %s3759_s13, %s2595_s27 }
 0xeb5   : > { %3002 = vrsqrt.f32 %v2178_v60 }
 0xebf   : > { %v3003_v7 = vpop.eup %3002 }
 0xec0   : > { %2893 = vpush %v3003_v7 }
 0xef1   : > { %s2894_s24 = spop %2893 }
 0xef2   : > { %v2193_v49 = vstv %s2894_s24 }
 0xf53   : > { %v2154_v36 = vpop.f32.mrb[24].mxu1 }
 0xf54   : > { %v2155_v37 = vadd.f32 %v2581_v35, %v2154_v36  ;;  %v2875_v40 = vpop.f32.mrb[25].mxu1 }
 0xf55   : > { %v2157_v41 = vpop.f32.mrb[26].mxu1 }
 0xf56   : > { %v2161_v42 = vmax.f32 %v2155_v37, 0.0  ;;  %v2158_v11 = vadd.f32 %v2581_v35, %v2157_v41  ;;  %v2876_v33 = vpop.f32.mrb[27].mxu1 }
 0xf58   : > { %v3699_v45 = vadd.f32 %v3011_v44, %v2161_v42  ;;  %v2162_v46 = vmax.f32 %v2158_v11, 0.0 }
 0xf5a   : > { %v3701_v39 = vadd.f32 %v3011_v44, %v2162_v46  ;;  %v2187_v48 = vmul.f32 %v2185_v43, %v3699_v45 }
 0xf5c   : > { %2189 = vadd.xlane.f32.xlu1 %v2187_v48  ;;  %v2188_v10 = vmul.f32 %v2185_v43, %v3701_v39 }
 0xf60   : > { %2191 = vadd.xlane.f32.xlu1 %v2188_v10 }
 0xfe9   : > { %v2190_v32 = vpop.xlane.xlu1 %2189 }
 0xfea   : > { %v2194_v23 = vmul.f32 %v2193_v49, %v2190_v32 }
 0xfec   : > { %3004 = vtanh.f32 %v2194_v23 }
 0xfed   : > { %v2192_v27 = vpop.xlane.xlu1 %2191 }
 0xfee   : > { %v2195_v50 = vmul.f32 %v2193_v49, %v2192_v27 }
 0xff0   : > { %3006 = vtanh.f32 %v2195_v50 }
 0xff6   : > { %v3005_v51 = vpop.eup %3004 }
 0xff7   : > { %v2198_v52 = vsel %vm1750_vm4, %v3005_v51, -1e+30  ;;  %v2273_v18 = vmul.f32 %v3005_v51, %v3699_v45 }
 0xff8   : > { %2238 = vperm.xlu1 %2911, %v2198_v52  }
 0xffa   : > { %v3007_v54 = vpop.eup %3006 }
 0xffb   : > { %v2199_v56 = vsel %vm1751_vm15, %v3007_v54, -1e+30  ;;  %v2274_v0 = vmul.f32 %v3007_v54, %v3701_v39 }
 0xffc   : > { %2243 = vperm.xlu0 %2910, %v2199_v56  }
0x1021   : > { %2200 = vxpose.xlu1.b32.start [1/2] (short) (narrow) %v2198_v52, 8 }
0x1025   : > { %2201 = vxpose.xlu1.b32.end [2/2] (short) (narrow) %v2199_v56, 8 }
0x1077   : > { %v2239_v58 = vpop.permute.xlu1 %2238 }
0x107b   : > { %v2244_v63 = vpop.permute.xlu0 %2243 }
0x10a1   : > { %v2216_v61 = vpop.trf.xlu1 }
0x10a2   : > { %v2235_v62 = vrot.slane %v2216_v61, %v3333_v55 }
0x10a4   : > { %vm2246_vm7 = vcmp.gt.f32.partialorder %v2235_v62, %v2239_v58  ;;  %vm2248_vm14 = vcmp.eq.f32.partialorder %v2235_v62, %v2239_v58  ;;  %vm2249_vm3 = vcmp.eq.f32.partialorder %v2235_v62, %v2244_v63  ;;  %vm2247_vm9 = vcmp.gt.f32.partialorder %v2235_v62, %v2244_v63 }
0x10a5   : > { %vm2250_vm6 = vmand %vm2248_vm14, %vm1193_vm12 }
0x10a6   : > { %vm2252_vm10 = vmor %vm2246_vm7, %vm2250_vm6 }
0x10a7   : > { %v2254_v4 = vsel %vm2252_vm10, 1.0, %v3020_v1  ;;  %vm2251_vm11 = vmand %vm2249_vm3, %vm1194_vm8 }
0x10a8   : > { %v2256_v9 = vsel %vm631_vm1, %v2254_v4, 0.0  ;;  %vm2253_vm13 = vmor %vm2247_vm9, %vm2251_vm11 }
0x10a9   : > { %2257 = vadd.xlane.f32.xlu0 %v2256_v9  ;;  %v2255_v5 = vsel %vm2253_vm13, 1.0, %v3020_v1 }
0x10aa   : > { %v2259_v20 = vsel %vm631_vm1, %v2255_v5, 0.0 }
0x10ad   : > { %2260 = vadd.xlane.f32.xlu0 %v2259_v20 }
0x1136   : > { %v2258_v38 = vpop.xlane.xlu0 %2257 }
0x1137   : > { %vm2265_vm12 = vcmp.lt.f32.partialorder %v2258_v38, %v2264_v53 }
0x1138   : > { %vm2267_vm0 = vmand %vm1750_vm4, %vm2265_vm12 }
0x1139   : > { %v2269_v25 = vsel %vm2267_vm0, 1.0, %v3020_v1 }
0x113a   : > { %v2261_v26 = vpop.xlane.xlu0 %2260  ;;  %vm2271_vm8 = vcmp.gt.f32.partialorder %v2269_v25, 0.0  ;;  %v2287_v29 = vsel %vm1207_vm5, %v2269_v25, 0.0 }
0x113b   : > { %vm2266_vm2 = vcmp.lt.f32.partialorder %v2261_v26, %v2264_v53  ;;  %v2275_v47 = vsel %vm2271_vm8, 1, %v3022_v3 }
0x113c   : > { %vm2268_vm7 = vmand %vm1751_vm15, %vm2266_vm2  ;;  %2278 = vperm.xlu0 %2910, %v2275_v47  }
0x113d   : > { %v2270_v14 = vsel %vm2268_vm7, 1.0, %v3020_v1 }
0x113e   : > { %vm2272_vm1 = vcmp.gt.f32.partialorder %v2270_v14, 0.0  ;;  %v2288_v15 = vsel %vm1207_vm5, %v2270_v14, 0.0 }
0x113f   : > { %v2276_v13 = vsel %vm2272_vm1, 1, %v3022_v3  ;;  %v2289_v16 = vadd.f32 %v2288_v15, %v2287_v29 }
0x1140   : > { %2281 = vperm.xlu0 %2910, %v2276_v13  }
0x1141   : > { %2290 = vadd.xlane.f32.xlu1 %v2289_v16 }
0x11bb   : > { %v2279_v17 = vpop.permute.xlu0 %2278 }
0x11bc   : > { %vm2283_vm4 = vcmp.eq.s32.totalorder %v2279_v17, 1 }
0x11bd   : > { %v2285_v8 = vsel %vm2283_vm4, %v2273_v18, 0.0  ;;  %v2310_v1 = vsel %vm2283_vm4, %v2273_v18, -1e+30 }
0x11bf   : > { %v2282_v6 = vpop.permute.xlu0 %2281 }
0x11c0   : > { %vm2284_vm15 = vcmp.eq.s32.totalorder %v2282_v6, 1 }
0x11c1   : > { %v2286_v19 = vsel %vm2284_vm15, %v2274_v0, 0.0  ;;  %v2311_v21 = vsel %vm2284_vm15, %v2274_v0, -1e+30 }
0x11c2   : > { %v2299_v22 = vadd.f32 %v2286_v19, %v2285_v8  ;;  %v2312_v24 = vmax.f32 %v2310_v1, %v2311_v21 }
0x11c4   : > { %v2313_v60 = vrot.slane %v2312_v24, 4  ;;  %v2300_v35 = vrot.slane %v2299_v22, 4 }
0x11c6   : > { %v2314_v7 = vmax.f32 %v2312_v24, %v2313_v60  ;;  %v2301_v37 = vadd.f32 %v2300_v35, %v2299_v22 }
0x11c8   : > { %v2315_v36 = vrot.slane %v2314_v7, 2  ;;  %v2302_v41 = vrot.slane %v2301_v37, 2 }
0x11ca   : > { %v2316_v40 = vmax.f32 %v2314_v7, %v2315_v36  ;;  %v2303_v33 = vadd.f32 %v2302_v41, %v2301_v37 }
0x11cc   : > { %v2317_v42 = vrot.slane %v2316_v40, 1  ;;  %v2304_v46 = vrot.slane %v2303_v33, 1 }
0x11ce   : > { %v2291_v59 = vpop.xlane.xlu1 %2290  ;;  %v2318_v43 = vmax.f32 %v2316_v40, %v2317_v42  ;;  %v2305_v10 = vadd.f32 %v2304_v46, %v2303_v33 }
0x11cf   : > { %v2292_v28 = vrot.slane %v2291_v59, 4 }
0x11d1   : > { %v2293_v3 = vadd.f32 %v2292_v28, %v2291_v59 }
0x11d3   : > { %v2294_v30 = vrot.slane %v2293_v3, 2 }
0x11d5   : > { %v2295_v31 = vadd.f32 %v2294_v30, %v2293_v3 }
0x11d7   : > { %v2296_v57 = vrot.slane %v2295_v31, 1 }
0x11d9   : > { %v2297_v34 = vadd.f32 %v2296_v57, %v2295_v31 }
0x11db   : > { %2895 = vpush %v2297_v34 }
0x120c   : > { %s2896_s30 = spop %2895 }
0x120d   : > { %s2306_s22 = smax.f32 %s3024_s28, %s2896_s30  ;;  %p2319_p6 = scmp.gt.f32.partialorder %s2896_s30, 0.0 }
0x120e   : > { %v2307_v11 = vstv %s2306_s22 }
0x120f   : > { %3008 = vrcp.f32 %v2307_v11  ;;  %s2320_s20 = scalar_select %p2319_p6, 1, 0 }
0x1211   : > { %v2321_v44 = vstv %s2320_s20 }
0x1212   : > { %vm2322_vm5 = vcmp.eq.s32.totalorder %v2321_v44, 1 }
0x1213   : > { %v2323_v45 = vsel %vm2322_vm5, %v2318_v43, 0.0 }
0x1214   : > { %v2324_v39 = vadd.f32 %v2323_v45, %v3680_v2 }
0x1216   : > { %v2329_v48 = vrot.slane %v2324_v39, %v3333_v55 }
0x1218   : > { %2334 = vst [vmem:[%s480_s16] sm:$0xff] %v2329_v48 }
0x1219   : > { %v3009_v49 = vpop.eup %3008 }
0x121a   : > { %v2309_v32 = vmul.f32 %v3009_v49, %v2305_v10 }
0x121c   : > { %v2325_v23 = vadd.f32 %v2309_v32, %v3682_v12 }
0x121e   : > { %v2333_v27 = vrot.slane %v2325_v23, %v3333_v55 }
0x1220   : > { %2335 = vst [vmem:[%s480_s16 + $0x8] sm:$0xff] %v2333_v27 }
0x1221 PF: > { %s23_s25 = sadd.s32 1, %s3018_s25  }
0x1222   : > { %p20_p7 = scmp.ge.s32.totalorder %s23_s25, 4  }
0x1224   :  { %22 = sbr.rel (!%p20_p7) target bundleno = 1 (0x1), region = 118 }

</bundles_post_ra>
